<compile_context>
chip_gen: v5e
topology: v5e:2x2
jax: 0.10.0
libtpu: 0.0.40
codegen_flags: <defaults>
</compile_context>

<pallas_src>
import jax
import jax.numpy as jnp
import numpy as np
from jax import lax
from jax.experimental import pallas as pl
from jax.experimental.pallas import tpu as pltpu

# ---------------- small, TPU-friendly config (mirrors module __init__) -------
B = 2                # batch
M = 8                # frames (max_frames == M here)
DIM = 32             # input feature dim (PyTorch default is 1024)
LAMB = 2
GROUPS = 4           # G
K = 8                # num_clusters
HIDDEN = 32
GATING_REDUCTION = 8
NUM_CLASSES = 5
DROP_RATE = 0.5

EXP = LAMB * DIM                 # 64  (fc0 expansion)
GS = LAMB * DIM // GROUPS        # 16  (group_size)
GK = GROUPS * K                  # 32
HR = HIDDEN // GATING_REDUCTION  # 4
VLAD_DIM = K * GS                # 128
R = B * M                        # 16 rows (frames stacked over batch)
BN_EPS = 1e-5
LANES = 128

# ---------------- static row offsets inside the packed weight slab -----------
def _aln8(n):
    return -(-n // 8) * 8

_cur = [0]
def _seg(nrows):
    off = _cur[0]
    _cur[0] += _aln8(nrows)
    return off

O_W0   = _seg(DIM)           # fc0 weight                   (DIM, EXP)
O_WGK  = _seg(EXP)           # fc_gk weight                 (EXP, GK)
O_WG   = _seg(EXP)           # fc_g weight, lane-expanded   (EXP, GK)
O_SGRP = _seg(GK)            # per-group softmax sum        (GK, GK)
O_TK   = _seg(GK)            # a_sum expansion              (GK, VLAD_DIM)
O_EK   = _seg(GROUPS * GK)   # per-group act expansion      G x (GK, VLAD_DIM)
O_EGS  = _seg(GROUPS * EXP)  # per-group x_dot expansion    G x (EXP, VLAD_DIM)
O_TGS  = _seg(VLAD_DIM)      # L1-norm group sum            (VLAD_DIM, VLAD_DIM)
O_MM   = _seg(R)             # same-frame selector (bn0)    (R, R)
O_L    = _seg(B)             # batch-row selector           (B, R)
O_MW0  = _seg(VLAD_DIM)      # classifier fc0               (VLAD_DIM, HIDDEN)
O_MW1  = _seg(HIDDEN)        # fc1                          (HIDDEN, HR)
O_MW2  = _seg(HR)            # fc2                          (HR, HIDDEN)
O_MWL  = _seg(HIDDEN)        # logistic, zero-padded lanes  (HIDDEN, VLAD_DIM)
O_CW2  = _seg(1)             # cluster_weights2 flattened   (1, VLAD_DIM)
O_BIAS = _seg(7)             # 7 bias rows
O_BN0G = _seg(R)             # bn0 gamma tiled per row      (R, 1)
O_BN0B = _seg(R)             # bn0 beta tiled per row       (R, 1)
W_ROWS = _cur[0]


# ---------------- Pallas kernel ----------------
def nextvlad_kernel(x_ref, drop_ref, s_ref, w_ref, out_ref):
    f32 = jnp.float32

    def mm(a, b):
        # default MXU precision (review: drop Precision.HIGHEST)
        return jnp.dot(a, b, preferred_element_type=f32)

    def bn_all(v, gamma, beta):
        # BatchNorm1d(1) in training mode: batch stats over every element of v.
        inv_n = 1.0 / (v.shape[0] * v.shape[1])
        mu = jnp.sum(jnp.sum(v, axis=1, keepdims=True), axis=0, keepdims=True) * inv_n
        d = v - mu
        var = jnp.sum(jnp.sum(d * d, axis=1, keepdims=True), axis=0, keepdims=True) * inv_n
        return d * lax.rsqrt(var + BN_EPS) * gamma + beta

    x = x_ref[...]                                              # (R, DIM)

    # ---------------- NeXtVLAD ----------------
    w0 = w_ref[O_W0:O_W0 + DIM, 0:EXP]
    b0 = w_ref[O_BIAS + 0:O_BIAS + 1, 0:EXP]
    x_dot = mm(x, w0) + b0                                      # (R, EXP)

    wgk = w_ref[O_WGK:O_WGK + EXP, 0:GK]
    bgk = w_ref[O_BIAS + 1:O_BIAS + 2, 0:GK]
    wgkx = mm(x_dot, wgk) + bgk                                 # (R, GK)

    # bn0 = BatchNorm1d(max_frames), training mode: per-frame stats over (B, GK).
    mm_sel = w_ref[O_MM:O_MM + R, 0:R]                          # same-frame selector
    inv_n0 = 1.0 / (B * GK)
    mu0 = jnp.sum(mm(mm_sel, wgkx), axis=1, keepdims=True) * inv_n0          # (R, 1)
    d0 = wgkx - mu0
    var0 = jnp.sum(mm(mm_sel, d0 * d0), axis=1, keepdims=True) * inv_n0      # (R, 1)
    g0 = w_ref[O_BN0G:O_BN0G + R, 0:1]
    be0 = w_ref[O_BN0B:O_BN0B + R, 0:1]
    wgkx = d0 * lax.rsqrt(var0 + BN_EPS) * g0 + be0             # (R, GK)

    # per-group softmax over clusters; GK stays on the lane axis (no reshape).
    # Global row max is a valid shift for every group; group sums via block-diag matmul.
    sgrp = w_ref[O_SGRP:O_SGRP + GK, 0:GK]
    e = jnp.exp(wgkx - jnp.max(wgkx, axis=1, keepdims=True))
    alpha_gk = e / mm(e, sgrp)                                  # (R, GK)

    # group attention; fc_g columns were pre-expanded host-side to GK lanes.
    wg = w_ref[O_WG:O_WG + EXP, 0:GK]
    bg = w_ref[O_BIAS + 2:O_BIAS + 3, 0:GK]
    alpha_g = jax.nn.sigmoid(mm(x_dot, wg) + bg)                # (R, GK)
    act_gk = alpha_gk * alpha_g                                 # (R, GK)

    # a = a_sum * cluster_weights2, expanded straight into (gs, k) lane order.
    lsel = w_ref[O_L:O_L + B, 0:R]                              # batch-row selector (B, R)
    tk = w_ref[O_TK:O_TK + GK, 0:VLAD_DIM]
    a_sum = mm(mm(lsel, act_gk), tk)                            # (B, VLAD_DIM)
    cw2 = w_ref[O_CW2:O_CW2 + 1, 0:VLAD_DIM]
    a = a_sum * cw2

    # VLAD contraction, fully lane-dense:
    #   p[r, gs*K + k] = sum_g x_dot[r, g*GS + gs] * act_gk[r, g*K + k]
    p = None
    for g in range(GROUPS):
        egs = w_ref[O_EGS + g * EXP:O_EGS + (g + 1) * EXP, 0:VLAD_DIM]
        ekg = w_ref[O_EK + g * GK:O_EK + (g + 1) * GK, 0:VLAD_DIM]
        term = mm(x_dot, egs) * mm(act_gk, ekg)                 # (R, VLAD_DIM)
        p = term if p is None else p + term
    vlad = mm(lsel, p) - a                                      # (B, VLAD_DIM)

    # L1-normalize over the group_size axis per (b, k); lanes stay dense.
    tgs = w_ref[O_TGS:O_TGS + VLAD_DIM, 0:VLAD_DIM]
    l1 = mm(jnp.abs(vlad), tgs)
    vlad = vlad / jnp.maximum(l1, 1e-12)

    # bn1 = BatchNorm1d(1): stats over all B*VLAD_DIM elements; affine scalars from SMEM.
    vlad = bn_all(vlad, s_ref[0], s_ref[1])

    # ---------------- gated MLP classifier ----------------
    vlad = vlad * drop_ref[...]                                 # inverted dropout
    mw0 = w_ref[O_MW0:O_MW0 + VLAD_DIM, 0:HIDDEN]
    mb0 = w_ref[O_BIAS + 3:O_BIAS + 4, 0:HIDDEN]
    act = mm(vlad, mw0) + mb0                                   # (B, HIDDEN)
    act = jnp.maximum(bn_all(act, s_ref[2], s_ref[3]), 0.0)

    mw1 = w_ref[O_MW1:O_MW1 + HIDDEN, 0:HR]
    mb1 = w_ref[O_BIAS + 4:O_BIAS + 5, 0:HR]
    gates = bn_all(mm(act, mw1) + mb1, s_ref[4], s_ref[5])      # (B, HR)

    mw2 = w_ref[O_MW2:O_MW2 + HR, 0:HIDDEN]
    mb2 = w_ref[O_BIAS + 5:O_BIAS + 6, 0:HIDDEN]
    gates = jax.nn.sigmoid(mm(gates, mw2) + mb2)                # (B, HIDDEN)
    act = act * gates

    # lane-dense output: logistic weights/bias zero-padded to 128 lanes; padding -> 0.5
    mwl = w_ref[O_MWL:O_MWL + HIDDEN, 0:VLAD_DIM]
    mbl = w_ref[O_BIAS + 6:O_BIAS + 7, 0:VLAD_DIM]
    out_ref[...] = jax.nn.sigmoid(mm(act, mwl) + mbl)           # (B, VLAD_DIM)


def nextvlad_model_forward(x, drop_mask, wslab, bn_scalars):
    b, m, d = x.shape
    x2 = x.reshape(b * m, d)
    out_padded = pl.pallas_call(
        nextvlad_kernel,
        grid=(1,),
        in_specs=[
            pl.BlockSpec(x2.shape, lambda i: (0, 0)),
            pl.BlockSpec(drop_mask.shape, lambda i: (0, 0)),
            pl.BlockSpec(memory_space=pltpu.MemorySpace.SMEM),      # BN scalars
            pl.BlockSpec(wslab.shape, lambda i: (0, 0)),            # packed weight slab
        ],
        out_specs=pl.BlockSpec((b, VLAD_DIM), lambda i: (0, 0)),
        out_shape=jax.ShapeDtypeStruct((b, VLAD_DIM), jnp.float32),
        compiler_params=pltpu.CompilerParams(dimension_semantics=("arbitrary",)),
    )(x2, drop_mask, bn_scalars, wslab)
    return out_padded[:, :NUM_CLASSES]


# ---------------- host-side parameter packing --------------------------------
def pack_params(raw):
    (nv_w0, nv_b0, nv_wgk, nv_bgk, nv_wg, nv_bg, nv_cw2,
     nv_bn0g, nv_bn0b, nv_bn1g, nv_bn1b,
     m_w0, m_b0, m_bn0g, m_bn0b,
     m_w1, m_b1, m_bn1g, m_bn1b,
     m_w2, m_b2, m_wlog, m_blog) = [np.asarray(p, np.float32) for p in raw]

    slab = np.zeros((W_ROWS, LANES), np.float32)

    def put(off, mat):
        r, c = mat.shape
        slab[off:off + r, :c] = mat

    # lane index helpers
    g_of = np.arange(GK) // K          # group id per fc_gk lane
    k_of = np.arange(GK) % K           # cluster id per fc_gk lane
    ge_of = np.arange(EXP) // GS       # group id per x_dot lane
    s_of = np.arange(EXP) % GS         # group_size id per x_dot lane
    gs_of = np.arange(VLAD_DIM) // K   # group_size id per vlad lane
    kv_of = np.arange(VLAD_DIM) % K    # cluster id per vlad lane

    put(O_W0, nv_w0)
    put(O_WGK, nv_wgk)
    put(O_WG, np.repeat(nv_wg, K, axis=1))                       # fc_g expanded over clusters
    put(O_SGRP, (g_of[:, None] == g_of[None, :]).astype(np.float32))
    put(O_TK, (k_of[:, None] == kv_of[None, :]).astype(np.float32))
    for g in range(GROUPS):
        ek_g = ((g_of[:, None] == g) &
                (k_of[:, None] == kv_of[None, :])).astype(np.float32)
        put(O_EK + g * GK, ek_g)
        egs_g = ((ge_of[:, None] == g) &
                 (s_of[:, None] == gs_of[None, :])).astype(np.float32)
        put(O_EGS + g * EXP, egs_g)
    put(O_TGS, (kv_of[:, None] == kv_of[None, :]).astype(np.float32))
    rr = np.arange(R)
    put(O_MM, (rr[:, None] % M == rr[None, :] % M).astype(np.float32))
    put(O_L, (np.arange(B)[:, None] == rr[None, :] // M).astype(np.float32))
    put(O_MW0, m_w0)                     # vlad flatten order gs*K+k matches kernel lanes
    put(O_MW1, m_w1)
    put(O_MW2, m_w2)
    put(O_MWL, m_wlog)                   # lanes >= NUM_CLASSES stay zero
    put(O_CW2, nv_cw2.reshape(1, VLAD_DIM))
    put(O_BIAS + 0, nv_b0.reshape(1, -1))
    put(O_BIAS + 1, nv_bgk.reshape(1, -1))
    put(O_BIAS + 2, np.repeat(nv_bg.reshape(1, -1), K, axis=1))
    put(O_BIAS + 3, m_b0.reshape(1, -1))
    put(O_BIAS + 4, m_b1.reshape(1, -1))
    put(O_BIAS + 5, m_b2.reshape(1, -1))
    put(O_BIAS + 6, m_blog.reshape(1, -1))
    slab[O_BN0G:O_BN0G + R, 0] = np.tile(nv_bn0g.reshape(-1), B)
    slab[O_BN0B:O_BN0B + R, 0] = np.tile(nv_bn0b.reshape(-1), B)

    sm = np.zeros((8,), np.float32)
    sm[0], sm[1] = nv_bn1g.reshape(()), nv_bn1b.reshape(())
    sm[2], sm[3] = m_bn0g.reshape(()), m_bn0b.reshape(())
    sm[4], sm[5] = m_bn1g.reshape(()), m_bn1b.reshape(())
    return jnp.asarray(slab), jnp.asarray(sm)


# ---------------- literal JAX translation of the PyTorch forward (reference) -
def torch_reference(x, drop_mask, raw):
    (nv_w0, nv_b0, nv_wgk, nv_bgk, nv_wg, nv_bg, nv_cw2,
     nv_bn0g, nv_bn0b, nv_bn1g, nv_bn1b,
     m_w0, m_b0, m_bn0g, m_bn0b,
     m_w1, m_b1, m_bn1g, m_bn1b,
     m_w2, m_b2, m_wlog, m_blog) = raw
    hi = lax.Precision.HIGHEST

    def lin(v, w, bias):
        return jnp.dot(v, w, precision=hi) + bias

    def bn_train(v, gamma, beta, axes):
        mu = jnp.mean(v, axis=axes, keepdims=True)
        var = jnp.mean((v - mu) ** 2, axis=axes, keepdims=True)
        return (v - mu) * lax.rsqrt(var + BN_EPS) * gamma + beta

    b, m, _ = x.shape
    x_dot = lin(x, nv_w0, nv_b0)                                  # (B, M, EXP)
    x_tilde = x_dot.reshape(b, m, GROUPS, GS)
    wgkx = lin(x_dot, nv_wgk, nv_bgk)                             # (B, M, GK)
    wgkx = bn_train(wgkx, nv_bn0g.reshape(1, m, 1), nv_bn0b.reshape(1, m, 1), (0, 2))
    wgkx = wgkx.reshape(b, m * GROUPS, K)
    alpha_gk = jax.nn.softmax(wgkx, axis=-1)
    alpha_g = jax.nn.sigmoid(lin(x_dot, nv_wg, nv_bg))            # (B, M, G)
    alpha_g = alpha_g.reshape(b, m * GROUPS, 1)
    activation = alpha_gk * alpha_g                               # (B, M*G, K)
    a_sum = jnp.sum(activation, axis=-2, keepdims=True)           # (B, 1, K)
    a = a_sum * nv_cw2[None, :, :]                                # (B, GS, K)
    activation_t = jnp.transpose(activation, (0, 2, 1))           # (B, K, M*G)
    rxt = x_tilde.reshape(b, m * GROUPS, GS)
    vlad = jnp.einsum('bkp,bpg->bkg', activation_t, rxt, precision=hi)   # (B, K, GS)
    vlad = jnp.transpose(vlad, (0, 2, 1))                         # (B, GS, K)
    vlad = vlad - a
    l1 = jnp.sum(jnp.abs(vlad), axis=1, keepdims=True)            # F.normalize(..., 1), dim=1
    vlad = vlad / jnp.maximum(l1, 1e-12)
    vlad = vlad.reshape(b, 1, K * GS)
    vlad = bn_train(vlad, nv_bn1g.reshape(1, 1, 1), nv_bn1b.reshape(1, 1, 1), (0, 2))
    vlad = vlad.reshape(b, K * GS)

    vlad = vlad * drop_mask
    act = lin(vlad, m_w0, m_b0)
    act = bn_train(act[:, None, :], m_bn0g.reshape(1, 1, 1), m_bn0b.reshape(1, 1, 1), (0, 2))[:, 0, :]
    act = jnp.maximum(act, 0.0)
    gates = lin(act, m_w1, m_b1)
    gates = bn_train(gates[:, None, :], m_bn1g.reshape(1, 1, 1), m_bn1b.reshape(1, 1, 1), (0, 2))[:, 0, :]
    gates = jax.nn.sigmoid(lin(gates, m_w2, m_b2))
    act = act * gates
    return jax.nn.sigmoid(lin(act, m_wlog, m_blog))


# ---------------- deterministic parameter init (shapes from __init__) --------
def init_params(key):
    keys = iter(jax.random.split(key, 64))

    def lin(fan_in, fan_out, scale=0.05):
        w = jax.random.normal(next(keys), (fan_in, fan_out), jnp.float32) * scale
        bias = jax.random.normal(next(keys), (1, fan_out), jnp.float32) * scale
        return w, bias

    def bn(shape):
        gamma = 1.0 + 0.1 * jax.random.normal(next(keys), shape, jnp.float32)
        beta = 0.1 * jax.random.normal(next(keys), shape, jnp.float32)
        return gamma, beta

    nv_w0, nv_b0 = lin(DIM, EXP)                 # NeXtVLAD.fc0
    nv_wgk, nv_bgk = lin(EXP, GK)                # NeXtVLAD.fc_gk
    nv_wg, nv_bg = lin(EXP, GROUPS)              # NeXtVLAD.fc_g
    nv_cw2 = jax.random.uniform(next(keys), (GS, K), jnp.float32)  # torch.rand init
    nv_bn0g, nv_bn0b = bn((M, 1))                # NeXtVLAD.bn0 (BatchNorm1d(max_frames))
    nv_bn1g, nv_bn1b = bn((1, 1))                # NeXtVLAD.bn1 (BatchNorm1d(1))
    m_w0, m_b0 = lin(VLAD_DIM, HIDDEN)           # model.fc0
    m_bn0g, m_bn0b = bn((1, 1))                  # model.bn0
    m_w1, m_b1 = lin(HIDDEN, HR)                 # model.fc1
    m_bn1g, m_bn1b = bn((1, 1))                  # model.bn1
    m_w2, m_b2 = lin(HR, HIDDEN)                 # model.fc2
    m_wlog, m_blog = lin(HIDDEN, NUM_CLASSES)    # model.logistic
    return (nv_w0, nv_b0, nv_wgk, nv_bgk, nv_wg, nv_bg, nv_cw2,
            nv_bn0g, nv_bn0b, nv_bn1g, nv_bn1b,
            m_w0, m_b0, m_bn0g, m_bn0b,
            m_w1, m_b1, m_bn1g, m_bn1b,
            m_w2, m_b2, m_wlog, m_blog)


if __name__ == "__main__":
    key = jax.random.PRNGKey(0)
    kx, kp, kd = jax.random.split(key, 3)

    x = jax.random.normal(kx, (B, M, DIM), jnp.float32)
    params = init_params(kp)

    keep = jax.random.bernoulli(kd, 1.0 - DROP_RATE, (B, VLAD_DIM))
    drop_mask = keep.astype(jnp.float32) / (1.0 - DROP_RATE)

    wslab, bn_scalars = pack_params(params)
    out = nextvlad_model_forward(x, drop_mask, wslab, bn_scalars)
    out = jax.block_until_ready(out)

    # independent, literal translation of the PyTorch forward (HIGHEST precision)
    ref = torch_reference(x, drop_mask, params)
    assert out.shape == (B, NUM_CLASSES)
    assert bool(jnp.all(jnp.isfinite(out))), "non-finite output"
    max_err = float(jnp.max(jnp.abs(out - ref)))
    assert max_err < 2e-2, f"kernel/reference mismatch, max abs err = {max_err}"
    print("KERNEL_OK")
</pallas_src>

<mosaic_0001>
module attributes {stable_mosaic.version = 11 : i64} {
  func.func @nextvlad_kernel(%arg0: i32, %arg1: memref<16x32xf32, #tpu.memory_space<vmem>>, %arg2: memref<2x128xf32, #tpu.memory_space<vmem>>, %arg3: memref<8xf32, #tpu.memory_space<smem>>, %arg4: memref<1008x128xf32, #tpu.memory_space<vmem>>, %arg5: memref<2x128xf32, #tpu.memory_space<vmem>>) attributes {dimension_semantics = [#tpu.dimension_semantics<arbitrary>], iteration_bounds = array<i64: 1>, scalar_prefetch = 0 : i64, scratch_operands = 0 : i64, tpu.core_type = #tpu.core_type<tc>, window_params = [{pipeline_mode = #tpu.pipeline_mode<synchronous>, transform_indices = @transform_0, window_bounds = array<i64: 16, 32>}, {pipeline_mode = #tpu.pipeline_mode<synchronous>, transform_indices = @transform_1, window_bounds = array<i64: 2, 128>}, {transform_indices = @transform_2, window_bounds = array<i64: 8>}, {pipeline_mode = #tpu.pipeline_mode<synchronous>, transform_indices = @transform_3, window_bounds = array<i64: 1008, 128>}, {pipeline_mode = #tpu.pipeline_mode<synchronous>, transform_indices = @transform_4, window_bounds = array<i64: 2, 128>}]} {
    %c0 = arith.constant 0 : index
    %c0_0 = arith.constant 0 : index
    %0 = vector.load %arg1[%c0, %c0_0] : memref<16x32xf32, #tpu.memory_space<vmem>>, vector<16x32xf32>
    %c0_1 = arith.constant 0 : index
    %c0_2 = arith.constant 0 : index
    %1 = vector.load %arg4[%c0_1, %c0_2] : memref<1008x128xf32, #tpu.memory_space<vmem>>, vector<32x64xf32>
    %c968 = arith.constant 968 : index
    %c0_3 = arith.constant 0 : index
    %2 = vector.load %arg4[%c968, %c0_3] : memref<1008x128xf32, #tpu.memory_space<vmem>>, vector<1x64xf32>
    %cst = arith.constant dense<0.000000e+00> : vector<16x64xf32>
    %3 = tpu.matmul %0, %1, %cst {dimension_numbers = #tpu.dot_dimension_numbers<[1], [0], [0], [1], [0, 0, 1, 1], [], []>} : vector<16x32xf32>, vector<32x64xf32>, vector<16x64xf32> -> vector<16x64xf32>
    %4 = vector.broadcast %2 : vector<1x64xf32> to vector<16x64xf32>
    %5 = arith.addf %3, %4 : vector<16x64xf32>
    %c32 = arith.constant 32 : index
    %c0_4 = arith.constant 0 : index
    %6 = vector.load %arg4[%c32, %c0_4] : memref<1008x128xf32, #tpu.memory_space<vmem>>, vector<64x32xf32>
    %c969 = arith.constant 969 : index
    %c0_5 = arith.constant 0 : index
    %7 = vector.load %arg4[%c969, %c0_5] : memref<1008x128xf32, #tpu.memory_space<vmem>>, vector<1x32xf32>
    %cst_6 = arith.constant dense<0.000000e+00> : vector<16x32xf32>
    %8 = tpu.matmul %5, %6, %cst_6 {dimension_numbers = #tpu.dot_dimension_numbers<[1], [0], [0], [1], [0, 0, 1, 1], [], []>} : vector<16x64xf32>, vector<64x32xf32>, vector<16x32xf32> -> vector<16x32xf32>
    %9 = vector.broadcast %7 : vector<1x32xf32> to vector<16x32xf32>
    %10 = arith.addf %8, %9 : vector<16x32xf32>
    %c736 = arith.constant 736 : index
    %c0_7 = arith.constant 0 : index
    %11 = vector.load %arg4[%c736, %c0_7] : memref<1008x128xf32, #tpu.memory_space<vmem>>, vector<16x16xf32>
    %cst_8 = arith.constant dense<0.000000e+00> : vector<16x32xf32>
    %12 = tpu.matmul %11, %10, %cst_8 {dimension_numbers = #tpu.dot_dimension_numbers<[1], [0], [0], [1], [0, 0, 1, 1], [], []>} : vector<16x16xf32>, vector<16x32xf32>, vector<16x32xf32> -> vector<16x32xf32>
    %cst_9 = arith.constant dense<0.000000e+00> : vector<16xf32>
    %13 = vector.multi_reduction <add>, %12, %cst_9 [1] : vector<16x32xf32> to vector<16xf32>
    %14 = vector.shape_cast %13 : vector<16xf32> to vector<16x1xf32>
    %cst_10 = arith.constant 1.562500e-02 : f32
    %15 = vector.broadcast %cst_10 : f32 to vector<16x1xf32>
    %16 = arith.mulf %14, %15 : vector<16x1xf32>
    %17 = vector.broadcast %16 : vector<16x1xf32> to vector<16x32xf32>
    %18 = arith.subf %10, %17 : vector<16x32xf32>
    %19 = arith.mulf %18, %18 : vector<16x32xf32>
    %cst_11 = arith.constant dense<0.000000e+00> : vector<16x32xf32>
    %20 = tpu.matmul %11, %19, %cst_11 {dimension_numbers = #tpu.dot_dimension_numbers<[1], [0], [0], [1], [0, 0, 1, 1], [], []>} : vector<16x16xf32>, vector<16x32xf32>, vector<16x32xf32> -> vector<16x32xf32>
    %cst_12 = arith.constant dense<0.000000e+00> : vector<16xf32>
    %21 = vector.multi_reduction <add>, %20, %cst_12 [1] : vector<16x32xf32> to vector<16xf32>
    %22 = vector.shape_cast %21 : vector<16xf32> to vector<16x1xf32>
    %cst_13 = arith.constant 1.562500e-02 : f32
    %23 = vector.broadcast %cst_13 : f32 to vector<16x1xf32>
    %24 = arith.mulf %22, %23 : vector<16x1xf32>
    %c976 = arith.constant 976 : index
    %c0_14 = arith.constant 0 : index
    %25 = vector.load %arg4[%c976, %c0_14] : memref<1008x128xf32, #tpu.memory_space<vmem>>, vector<16x1xf32>
    %c992 = arith.constant 992 : index
    %c0_15 = arith.constant 0 : index
    %26 = vector.load %arg4[%c992, %c0_15] : memref<1008x128xf32, #tpu.memory_space<vmem>>, vector<16x1xf32>
    %cst_16 = arith.constant 9.99999974E-6 : f32
    %27 = vector.broadcast %cst_16 : f32 to vector<16x1xf32>
    %28 = arith.addf %24, %27 : vector<16x1xf32>
    %29 = math.rsqrt %28 : vector<16x1xf32>
    %30 = vector.broadcast %29 : vector<16x1xf32> to vector<16x32xf32>
    %31 = arith.mulf %18, %30 : vector<16x32xf32>
    %32 = vector.broadcast %25 : vector<16x1xf32> to vector<16x32xf32>
    %33 = arith.mulf %31, %32 : vector<16x32xf32>
    %34 = vector.broadcast %26 : vector<16x1xf32> to vector<16x32xf32>
    %35 = arith.addf %33, %34 : vector<16x32xf32>
    %c160 = arith.constant 160 : index
    %c0_17 = arith.constant 0 : index
    %36 = vector.load %arg4[%c160, %c0_17] : memref<1008x128xf32, #tpu.memory_space<vmem>>, vector<32x32xf32>
    %cst_18 = arith.constant dense<0xFF800000> : vector<16xf32>
    %37 = vector.multi_reduction <maximumf>, %35, %cst_18 [1] : vector<16x32xf32> to vector<16xf32>
    %38 = vector.shape_cast %37 : vector<16xf32> to vector<16x1xf32>
    %39 = vector.broadcast %38 : vector<16x1xf32> to vector<16x32xf32>
    %40 = arith.subf %35, %39 : vector<16x32xf32>
    %41 = math.exp %40 : vector<16x32xf32>
    %cst_19 = arith.constant dense<0.000000e+00> : vector<16x32xf32>
    %42 = tpu.matmul %41, %36, %cst_19 {dimension_numbers = #tpu.dot_dimension_numbers<[1], [0], [0], [1], [0, 0, 1, 1], [], []>} : vector<16x32xf32>, vector<32x32xf32>, vector<16x32xf32> -> vector<16x32xf32>
    %43 = arith.divf %41, %42 : vector<16x32xf32>
    %c96 = arith.constant 96 : index
    %c0_20 = arith.constant 0 : index
    %44 = vector.load %arg4[%c96, %c0_20] : memref<1008x128xf32, #tpu.memory_space<vmem>>, vector<64x32xf32>
    %c970 = arith.constant 970 : index
    %c0_21 = arith.constant 0 : index
    %45 = vector.load %arg4[%c970, %c0_21] : memref<1008x128xf32, #tpu.memory_space<vmem>>, vector<1x32xf32>
    %cst_22 = arith.constant dense<0.000000e+00> : vector<16x32xf32>
    %46 = tpu.matmul %5, %44, %cst_22 {dimension_numbers = #tpu.dot_dimension_numbers<[1], [0], [0], [1], [0, 0, 1, 1], [], []>} : vector<16x64xf32>, vector<64x32xf32>, vector<16x32xf32> -> vector<16x32xf32>
    %47 = vector.broadcast %45 : vector<1x32xf32> to vector<16x32xf32>
    %48 = arith.addf %46, %47 : vector<16x32xf32>
    %49 = arith.negf %48 : vector<16x32xf32>
    %50 = math.exp %49 : vector<16x32xf32>
    %cst_23 = arith.constant 1.000000e+00 : f32
    %51 = vector.broadcast %cst_23 : f32 to vector<16x32xf32>
    %52 = arith.addf %51, %50 : vector<16x32xf32>
    %53 = arith.divf %51, %52 : vector<16x32xf32>
    %54 = arith.mulf %43, %53 : vector<16x32xf32>
    %c752 = arith.constant 752 : index
    %c0_24 = arith.constant 0 : index
    %55 = vector.load %arg4[%c752, %c0_24] : memref<1008x128xf32, #tpu.memory_space<vmem>>, vector<2x16xf32>
    %c192 = arith.constant 192 : index
    %c0_25 = arith.constant 0 : index
    %56 = vector.load %arg4[%c192, %c0_25] : memref<1008x128xf32, #tpu.memory_space<vmem>>, vector<32x128xf32>
    %cst_26 = arith.constant dense<0.000000e+00> : vector<2x32xf32>
    %57 = tpu.matmul %55, %54, %cst_26 {dimension_numbers = #tpu.dot_dimension_numbers<[1], [0], [0], [1], [0, 0, 1, 1], [], []>} : vector<2x16xf32>, vector<16x32xf32>, vector<2x32xf32> -> vector<2x32xf32>
    %cst_27 = arith.constant dense<0.000000e+00> : vector<2x128xf32>
    %58 = tpu.matmul %57, %56, %cst_27 {dimension_numbers = #tpu.dot_dimension_numbers<[1], [0], [0], [1], [0, 0, 1, 1], [], []>} : vector<2x32xf32>, vector<32x128xf32>, vector<2x128xf32> -> vector<2x128xf32>
    %c960 = arith.constant 960 : index
    %c0_28 = arith.constant 0 : index
    %59 = vector.load %arg4[%c960, %c0_28] : memref<1008x128xf32, #tpu.memory_space<vmem>>, vector<1x128xf32>
    %60 = vector.broadcast %59 : vector<1x128xf32> to vector<2x128xf32>
    %61 = arith.mulf %58, %60 : vector<2x128xf32>
    %c352 = arith.constant 352 : index
    %c0_29 = arith.constant 0 : index
    %62 = vector.load %arg4[%c352, %c0_29] : memref<1008x128xf32, #tpu.memory_space<vmem>>, vector<64x128xf32>
    %c224 = arith.constant 224 : index
    %c0_30 = arith.constant 0 : index
    %63 = vector.load %arg4[%c224, %c0_30] : memref<1008x128xf32, #tpu.memory_space<vmem>>, vector<32x128xf32>
    %cst_31 = arith.constant dense<0.000000e+00> : vector<16x128xf32>
    %64 = tpu.matmul %5, %62, %cst_31 {dimension_numbers = #tpu.dot_dimension_numbers<[1], [0], [0], [1], [0, 0, 1, 1], [], []>} : vector<16x64xf32>, vector<64x128xf32>, vector<16x128xf32> -> vector<16x128xf32>
    %cst_32 = arith.constant dense<0.000000e+00> : vector<16x128xf32>
    %65 = tpu.matmul %54, %63, %cst_32 {dimension_numbers = #tpu.dot_dimension_numbers<[1], [0], [0], [1], [0, 0, 1, 1], [], []>} : vector<16x32xf32>, vector<32x128xf32>, vector<16x128xf32> -> vector<16x128xf32>
    %66 = arith.mulf %64, %65 : vector<16x128xf32>
    %c416 = arith.constant 416 : index
    %c0_33 = arith.constant 0 : index
    %67 = vector.load %arg4[%c416, %c0_33] : memref<1008x128xf32, #tpu.memory_space<vmem>>, vector<64x128xf32>
    %c256 = arith.constant 256 : index
    %c0_34 = arith.constant 0 : index
    %68 = vector.load %arg4[%c256, %c0_34] : memref<1008x128xf32, #tpu.memory_space<vmem>>, vector<32x128xf32>
    %cst_35 = arith.constant dense<0.000000e+00> : vector<16x128xf32>
    %69 = tpu.matmul %5, %67, %cst_35 {dimension_numbers = #tpu.dot_dimension_numbers<[1], [0], [0], [1], [0, 0, 1, 1], [], []>} : vector<16x64xf32>, vector<64x128xf32>, vector<16x128xf32> -> vector<16x128xf32>
    %cst_36 = arith.constant dense<0.000000e+00> : vector<16x128xf32>
    %70 = tpu.matmul %54, %68, %cst_36 {dimension_numbers = #tpu.dot_dimension_numbers<[1], [0], [0], [1], [0, 0, 1, 1], [], []>} : vector<16x32xf32>, vector<32x128xf32>, vector<16x128xf32> -> vector<16x128xf32>
    %71 = arith.mulf %69, %70 : vector<16x128xf32>
    %72 = arith.addf %66, %71 : vector<16x128xf32>
    %c480 = arith.constant 480 : index
    %c0_37 = arith.constant 0 : index
    %73 = vector.load %arg4[%c480, %c0_37] : memref<1008x128xf32, #tpu.memory_space<vmem>>, vector<64x128xf32>
    %c288 = arith.constant 288 : index
    %c0_38 = arith.constant 0 : index
    %74 = vector.load %arg4[%c288, %c0_38] : memref<1008x128xf32, #tpu.memory_space<vmem>>, vector<32x128xf32>
    %cst_39 = arith.constant dense<0.000000e+00> : vector<16x128xf32>
    %75 = tpu.matmul %5, %73, %cst_39 {dimension_numbers = #tpu.dot_dimension_numbers<[1], [0], [0], [1], [0, 0, 1, 1], [], []>} : vector<16x64xf32>, vector<64x128xf32>, vector<16x128xf32> -> vector<16x128xf32>
    %cst_40 = arith.constant dense<0.000000e+00> : vector<16x128xf32>
    %76 = tpu.matmul %54, %74, %cst_40 {dimension_numbers = #tpu.dot_dimension_numbers<[1], [0], [0], [1], [0, 0, 1, 1], [], []>} : vector<16x32xf32>, vector<32x128xf32>, vector<16x128xf32> -> vector<16x128xf32>
    %77 = arith.mulf %75, %76 : vector<16x128xf32>
    %78 = arith.addf %72, %77 : vector<16x128xf32>
    %c544 = arith.constant 544 : index
    %c0_41 = arith.constant 0 : index
    %79 = vector.load %arg4[%c544, %c0_41] : memref<1008x128xf32, #tpu.memory_space<vmem>>, vector<64x128xf32>
    %c320 = arith.constant 320 : index
    %c0_42 = arith.constant 0 : index
    %80 = vector.load %arg4[%c320, %c0_42] : memref<1008x128xf32, #tpu.memory_space<vmem>>, vector<32x128xf32>
    %cst_43 = arith.constant dense<0.000000e+00> : vector<16x128xf32>
    %81 = tpu.matmul %5, %79, %cst_43 {dimension_numbers = #tpu.dot_dimension_numbers<[1], [0], [0], [1], [0, 0, 1, 1], [], []>} : vector<16x64xf32>, vector<64x128xf32>, vector<16x128xf32> -> vector<16x128xf32>
    %cst_44 = arith.constant dense<0.000000e+00> : vector<16x128xf32>
    %82 = tpu.matmul %54, %80, %cst_44 {dimension_numbers = #tpu.dot_dimension_numbers<[1], [0], [0], [1], [0, 0, 1, 1], [], []>} : vector<16x32xf32>, vector<32x128xf32>, vector<16x128xf32> -> vector<16x128xf32>
    %83 = arith.mulf %81, %82 : vector<16x128xf32>
    %84 = arith.addf %78, %83 : vector<16x128xf32>
    %cst_45 = arith.constant dense<0.000000e+00> : vector<2x128xf32>
    %85 = tpu.matmul %55, %84, %cst_45 {dimension_numbers = #tpu.dot_dimension_numbers<[1], [0], [0], [1], [0, 0, 1, 1], [], []>} : vector<2x16xf32>, vector<16x128xf32>, vector<2x128xf32> -> vector<2x128xf32>
    %86 = arith.subf %85, %61 : vector<2x128xf32>
    %c608 = arith.constant 608 : index
    %c0_46 = arith.constant 0 : index
    %87 = vector.load %arg4[%c608, %c0_46] : memref<1008x128xf32, #tpu.memory_space<vmem>>, vector<128x128xf32>
    %88 = math.absf %86 : vector<2x128xf32>
    %cst_47 = arith.constant dense<0.000000e+00> : vector<2x128xf32>
    %89 = tpu.matmul %88, %87, %cst_47 {dimension_numbers = #tpu.dot_dimension_numbers<[1], [0], [0], [1], [0, 0, 1, 1], [], []>} : vector<2x128xf32>, vector<128x128xf32>, vector<2x128xf32> -> vector<2x128xf32>
    %cst_48 = arith.constant 9.99999996E-13 : f32
    %90 = vector.broadcast %cst_48 : f32 to vector<2x128xf32>
    %91 = arith.maximumf %89, %90 : vector<2x128xf32>
    %92 = arith.divf %86, %91 : vector<2x128xf32>
    %c0_49 = arith.constant 0 : index
    %93 = memref.load %arg3[%c0_49] : memref<8xf32, #tpu.memory_space<smem>>
    %c1 = arith.constant 1 : index
    %94 = memref.load %arg3[%c1] : memref<8xf32, #tpu.memory_space<smem>>
    %cst_50 = arith.constant dense<0.000000e+00> : vector<2xf32>
    %95 = vector.multi_reduction <add>, %92, %cst_50 [1] : vector<2x128xf32> to vector<2xf32>
    %96 = vector.shape_cast %95 : vector<2xf32> to vector<2x1xf32>
    %cst_51 = arith.constant dense<0.000000e+00> : vector<1xf32>
    %97 = vector.multi_reduction <add>, %96, %cst_51 [0] : vector<2x1xf32> to vector<1xf32>
    %98 = vector.shape_cast %97 : vector<1xf32> to vector<1x1xf32>
    %cst_52 = arith.constant 3.906250e-03 : f32
    %99 = vector.broadcast %cst_52 : f32 to vector<1x1xf32>
    %100 = arith.mulf %98, %99 : vector<1x1xf32>
    %101 = vector.broadcast %100 : vector<1x1xf32> to vector<2x128xf32>
    %102 = arith.subf %92, %101 : vector<2x128xf32>
    %103 = arith.mulf %102, %102 : vector<2x128xf32>
    %cst_53 = arith.constant dense<0.000000e+00> : vector<2xf32>
    %104 = vector.multi_reduction <add>, %103, %cst_53 [1] : vector<2x128xf32> to vector<2xf32>
    %105 = vector.shape_cast %104 : vector<2xf32> to vector<2x1xf32>
    %cst_54 = arith.constant dense<0.000000e+00> : vector<1xf32>
    %106 = vector.multi_reduction <add>, %105, %cst_54 [0] : vector<2x1xf32> to vector<1xf32>
    %107 = vector.shape_cast %106 : vector<1xf32> to vector<1x1xf32>
    %cst_55 = arith.constant 3.906250e-03 : f32
    %108 = vector.broadcast %cst_55 : f32 to vector<1x1xf32>
    %109 = arith.mulf %107, %108 : vector<1x1xf32>
    %cst_56 = arith.constant 9.99999974E-6 : f32
    %110 = vector.broadcast %cst_56 : f32 to vector<1x1xf32>
    %111 = arith.addf %109, %110 : vector<1x1xf32>
    %112 = math.rsqrt %111 : vector<1x1xf32>
    %113 = vector.broadcast %112 : vector<1x1xf32> to vector<2x128xf32>
    %114 = arith.mulf %102, %113 : vector<2x128xf32>
    %115 = vector.broadcast %93 : f32 to vector<2x128xf32>
    %116 = arith.mulf %114, %115 : vector<2x128xf32>
    %117 = vector.broadcast %94 : f32 to vector<2x128xf32>
    %118 = arith.addf %116, %117 : vector<2x128xf32>
    %c0_57 = arith.constant 0 : index
    %c0_58 = arith.constant 0 : index
    %119 = vector.load %arg2[%c0_57, %c0_58] : memref<2x128xf32, #tpu.memory_space<vmem>>, vector<2x128xf32>
    %120 = arith.mulf %118, %119 : vector<2x128xf32>
    %c760 = arith.constant 760 : index
    %c0_59 = arith.constant 0 : index
    %121 = vector.load %arg4[%c760, %c0_59] : memref<1008x128xf32, #tpu.memory_space<vmem>>, vector<128x32xf32>
    %c971 = arith.constant 971 : index
    %c0_60 = arith.constant 0 : index
    %122 = vector.load %arg4[%c971, %c0_60] : memref<1008x128xf32, #tpu.memory_space<vmem>>, vector<1x32xf32>
    %cst_61 = arith.constant dense<0.000000e+00> : vector<2x32xf32>
    %123 = tpu.matmul %120, %121, %cst_61 {dimension_numbers = #tpu.dot_dimension_numbers<[1], [0], [0], [1], [0, 0, 1, 1], [], []>} : vector<2x128xf32>, vector<128x32xf32>, vector<2x32xf32> -> vector<2x32xf32>
    %124 = vector.broadcast %122 : vector<1x32xf32> to vector<2x32xf32>
    %125 = arith.addf %123, %124 : vector<2x32xf32>
    %c2 = arith.constant 2 : index
    %126 = memref.load %arg3[%c2] : memref<8xf32, #tpu.memory_space<smem>>
    %c3 = arith.constant 3 : index
    %127 = memref.load %arg3[%c3] : memref<8xf32, #tpu.memory_space<smem>>
    %cst_62 = arith.constant dense<0.000000e+00> : vector<2xf32>
    %128 = vector.multi_reduction <add>, %125, %cst_62 [1] : vector<2x32xf32> to vector<2xf32>
    %129 = vector.shape_cast %128 : vector<2xf32> to vector<2x1xf32>
    %cst_63 = arith.constant dense<0.000000e+00> : vector<1xf32>
    %130 = vector.multi_reduction <add>, %129, %cst_63 [0] : vector<2x1xf32> to vector<1xf32>
    %131 = vector.shape_cast %130 : vector<1xf32> to vector<1x1xf32>
    %cst_64 = arith.constant 1.562500e-02 : f32
    %132 = vector.broadcast %cst_64 : f32 to vector<1x1xf32>
    %133 = arith.mulf %131, %132 : vector<1x1xf32>
    %134 = vector.broadcast %133 : vector<1x1xf32> to vector<2x32xf32>
    %135 = arith.subf %125, %134 : vector<2x32xf32>
    %136 = arith.mulf %135, %135 : vector<2x32xf32>
    %cst_65 = arith.constant dense<0.000000e+00> : vector<2xf32>
    %137 = vector.multi_reduction <add>, %136, %cst_65 [1] : vector<2x32xf32> to vector<2xf32>
    %138 = vector.shape_cast %137 : vector<2xf32> to vector<2x1xf32>
    %cst_66 = arith.constant dense<0.000000e+00> : vector<1xf32>
    %139 = vector.multi_reduction <add>, %138, %cst_66 [0] : vector<2x1xf32> to vector<1xf32>
    %140 = vector.shape_cast %139 : vector<1xf32> to vector<1x1xf32>
    %cst_67 = arith.constant 1.562500e-02 : f32
    %141 = vector.broadcast %cst_67 : f32 to vector<1x1xf32>
    %142 = arith.mulf %140, %141 : vector<1x1xf32>
    %cst_68 = arith.constant 9.99999974E-6 : f32
    %143 = vector.broadcast %cst_68 : f32 to vector<1x1xf32>
    %144 = arith.addf %142, %143 : vector<1x1xf32>
    %145 = math.rsqrt %144 : vector<1x1xf32>
    %146 = vector.broadcast %145 : vector<1x1xf32> to vector<2x32xf32>
    %147 = arith.mulf %135, %146 : vector<2x32xf32>
    %148 = vector.broadcast %126 : f32 to vector<2x32xf32>
    %149 = arith.mulf %147, %148 : vector<2x32xf32>
    %150 = vector.broadcast %127 : f32 to vector<2x32xf32>
    %151 = arith.addf %149, %150 : vector<2x32xf32>
    %cst_69 = arith.constant 0.000000e+00 : f32
    %152 = vector.broadcast %cst_69 : f32 to vector<2x32xf32>
    %153 = arith.maximumf %151, %152 : vector<2x32xf32>
    %c888 = arith.constant 888 : index
    %c0_70 = arith.constant 0 : index
    %154 = vector.load %arg4[%c888, %c0_70] : memref<1008x128xf32, #tpu.memory_space<vmem>>, vector<32x4xf32>
    %c972 = arith.constant 972 : index
    %c0_71 = arith.constant 0 : index
    %155 = vector.load %arg4[%c972, %c0_71] : memref<1008x128xf32, #tpu.memory_space<vmem>>, vector<1x4xf32>
    %cst_72 = arith.constant dense<0.000000e+00> : vector<2x4xf32>
    %156 = tpu.matmul %153, %154, %cst_72 {dimension_numbers = #tpu.dot_dimension_numbers<[1], [0], [0], [1], [0, 0, 1, 1], [], []>} : vector<2x32xf32>, vector<32x4xf32>, vector<2x4xf32> -> vector<2x4xf32>
    %157 = vector.broadcast %155 : vector<1x4xf32> to vector<2x4xf32>
    %158 = arith.addf %156, %157 : vector<2x4xf32>
    %c4 = arith.constant 4 : index
    %159 = memref.load %arg3[%c4] : memref<8xf32, #tpu.memory_space<smem>>
    %c5 = arith.constant 5 : index
    %160 = memref.load %arg3[%c5] : memref<8xf32, #tpu.memory_space<smem>>
    %cst_73 = arith.constant dense<0.000000e+00> : vector<2xf32>
    %161 = vector.multi_reduction <add>, %158, %cst_73 [1] : vector<2x4xf32> to vector<2xf32>
    %162 = vector.shape_cast %161 : vector<2xf32> to vector<2x1xf32>
    %cst_74 = arith.constant dense<0.000000e+00> : vector<1xf32>
    %163 = vector.multi_reduction <add>, %162, %cst_74 [0] : vector<2x1xf32> to vector<1xf32>
    %164 = vector.shape_cast %163 : vector<1xf32> to vector<1x1xf32>
    %cst_75 = arith.constant 1.250000e-01 : f32
    %165 = vector.broadcast %cst_75 : f32 to vector<1x1xf32>
    %166 = arith.mulf %164, %165 : vector<1x1xf32>
    %167 = vector.broadcast %166 : vector<1x1xf32> to vector<2x4xf32>
    %168 = arith.subf %158, %167 : vector<2x4xf32>
    %169 = arith.mulf %168, %168 : vector<2x4xf32>
    %cst_76 = arith.constant dense<0.000000e+00> : vector<2xf32>
    %170 = vector.multi_reduction <add>, %169, %cst_76 [1] : vector<2x4xf32> to vector<2xf32>
    %171 = vector.shape_cast %170 : vector<2xf32> to vector<2x1xf32>
    %cst_77 = arith.constant dense<0.000000e+00> : vector<1xf32>
    %172 = vector.multi_reduction <add>, %171, %cst_77 [0] : vector<2x1xf32> to vector<1xf32>
    %173 = vector.shape_cast %172 : vector<1xf32> to vector<1x1xf32>
    %cst_78 = arith.constant 1.250000e-01 : f32
    %174 = vector.broadcast %cst_78 : f32 to vector<1x1xf32>
    %175 = arith.mulf %173, %174 : vector<1x1xf32>
    %cst_79 = arith.constant 9.99999974E-6 : f32
    %176 = vector.broadcast %cst_79 : f32 to vector<1x1xf32>
    %177 = arith.addf %175, %176 : vector<1x1xf32>
    %178 = math.rsqrt %177 : vector<1x1xf32>
    %179 = vector.broadcast %178 : vector<1x1xf32> to vector<2x4xf32>
    %180 = arith.mulf %168, %179 : vector<2x4xf32>
    %181 = vector.broadcast %159 : f32 to vector<2x4xf32>
    %182 = arith.mulf %180, %181 : vector<2x4xf32>
    %183 = vector.broadcast %160 : f32 to vector<2x4xf32>
    %184 = arith.addf %182, %183 : vector<2x4xf32>
    %c920 = arith.constant 920 : index
    %c0_80 = arith.constant 0 : index
    %185 = vector.load %arg4[%c920, %c0_80] : memref<1008x128xf32, #tpu.memory_space<vmem>>, vector<4x32xf32>
    %c973 = arith.constant 973 : index
    %c0_81 = arith.constant 0 : index
    %186 = vector.load %arg4[%c973, %c0_81] : memref<1008x128xf32, #tpu.memory_space<vmem>>, vector<1x32xf32>
    %cst_82 = arith.constant dense<0.000000e+00> : vector<2x32xf32>
    %187 = tpu.matmul %184, %185, %cst_82 {dimension_numbers = #tpu.dot_dimension_numbers<[1], [0], [0], [1], [0, 0, 1, 1], [], []>} : vector<2x4xf32>, vector<4x32xf32>, vector<2x32xf32> -> vector<2x32xf32>
    %188 = vector.broadcast %186 : vector<1x32xf32> to vector<2x32xf32>
    %189 = arith.addf %187, %188 : vector<2x32xf32>
    %190 = arith.negf %189 : vector<2x32xf32>
    %191 = math.exp %190 : vector<2x32xf32>
    %cst_83 = arith.constant 1.000000e+00 : f32
    %192 = vector.broadcast %cst_83 : f32 to vector<2x32xf32>
    %193 = arith.addf %192, %191 : vector<2x32xf32>
    %194 = arith.divf %192, %193 : vector<2x32xf32>
    %195 = arith.mulf %153, %194 : vector<2x32xf32>
    %c928 = arith.constant 928 : index
    %c0_84 = arith.constant 0 : index
    %196 = vector.load %arg4[%c928, %c0_84] : memref<1008x128xf32, #tpu.memory_space<vmem>>, vector<32x128xf32>
    %c974 = arith.constant 974 : index
    %c0_85 = arith.constant 0 : index
    %197 = vector.load %arg4[%c974, %c0_85] : memref<1008x128xf32, #tpu.memory_space<vmem>>, vector<1x128xf32>
    %cst_86 = arith.constant dense<0.000000e+00> : vector<2x128xf32>
    %198 = tpu.matmul %195, %196, %cst_86 {dimension_numbers = #tpu.dot_dimension_numbers<[1], [0], [0], [1], [0, 0, 1, 1], [], []>} : vector<2x32xf32>, vector<32x128xf32>, vector<2x128xf32> -> vector<2x128xf32>
    %199 = vector.broadcast %197 : vector<1x128xf32> to vector<2x128xf32>
    %200 = arith.addf %198, %199 : vector<2x128xf32>
    %201 = arith.negf %200 : vector<2x128xf32>
    %202 = math.exp %201 : vector<2x128xf32>
    %cst_87 = arith.constant 1.000000e+00 : f32
    %203 = vector.broadcast %cst_87 : f32 to vector<2x128xf32>
    %204 = arith.addf %203, %202 : vector<2x128xf32>
    %205 = arith.divf %203, %204 : vector<2x128xf32>
    %c0_88 = arith.constant 0 : index
    %c0_89 = arith.constant 0 : index
    %206 = vector.load %arg5[%c0_88, %c0_89] : memref<2x128xf32, #tpu.memory_space<vmem>>, vector<2x128xf32>
    tpu.vector_store %arg5[%c0_88, %c0_89], %205 {strides = array<i32>} : memref<2x128xf32, #tpu.memory_space<vmem>>, vector<2x128xf32>,
    return
  }
  func.func @transform_0(%arg0: i32) -> (i32, i32) {
    %c0_i32 = arith.constant 0 : i32
    %c0_i32_0 = arith.constant 0 : i32
    %c0_i32_1 = arith.constant 0 : i32
    return %c0_i32, %c0_i32_0 : i32, i32
  }
  func.func @transform_1(%arg0: i32) -> (i32, i32) {
    %c0_i32 = arith.constant 0 : i32
    %c0_i32_0 = arith.constant 0 : i32
    %c0_i32_1 = arith.constant 0 : i32
    return %c0_i32, %c0_i32_0 : i32, i32
  }
  func.func @transform_2(%arg0: i32) -> i32 {
    %c0_i32 = arith.constant 0 : i32
    %c0_i32_0 = arith.constant 0 : i32
    return %c0_i32 : i32
  }
  func.func @transform_3(%arg0: i32) -> (i32, i32) {
    %c0_i32 = arith.constant 0 : i32
    %c0_i32_0 = arith.constant 0 : i32
    %c0_i32_1 = arith.constant 0 : i32
    return %c0_i32, %c0_i32_0 : i32, i32
  }
  func.func @transform_4(%arg0: i32) -> (i32, i32) {
    %c0_i32 = arith.constant 0 : i32
    %c0_i32_0 = arith.constant 0 : i32
    %c0_i32_1 = arith.constant 0 : i32
    return %c0_i32, %c0_i32_0 : i32, i32
  }
}

</mosaic_0001>

<bundles_post_ra>
// kernel: tpu_custom_call.1
= control target key start
LH: loop header
LB: loop body
LE: loop exit
PB: predicated region body
PF: predicated region fallthrough
CT: control target
= control target key end

     0   :  { %9 = vsyncpa [#allocation3], 0  ;;  %s1500_s0 = inlined_call_operand.hbm [shape: f32[16,32], index: 0, kind: input, shape index: {}]   ;;  %s1501_s1 = inlined_call_operand.hbm [shape: f32[2,128], index: 1, kind: input, shape index: {}]   ;;  %s1502_s2 = inlined_call_operand.vmem [shape: f32[8], index: 2, kind: input, shape index: {}]   ;;  %s1503_s3 = inlined_call_operand.hbm [shape: f32[1008,128], index: 3, kind: input, shape index: {}]   ;;  %s1504_s4 = inlined_call_operand.hbm [shape: f32[2,128], index: 4, kind: output, shape index: {}]  }
   0x1   :  { %10 = vsyncpa [#allocation7], 0 }
   0x2   :  { %11 = vsyncpa [#allocation5], 0  ;;  %s31_s17 = sshll.u32 %s1501_s1, 4  ;;  %s32_s17 = int_to_ptr.hbm [resolvable:$true] %s31_s17 }
   0x3   :  { %12 = vsyncpa [#allocation4], 0  ;;  %s1344_s18 = smov [#allocation6]   ;;  %s17_s22 = sshll.u32 %s1500_s0, 4  ;;  %s18_s22 = int_to_ptr.hbm [resolvable:$true] %s17_s22 }
   0x4   :  { %s33_s19 = sshll.u32 %s1344_s18, 4  ;;  %s1345_s23 = smov [#allocation2]   ;;  %s34_s19 = int_to_ptr.vmem [resolvable:$true] %s33_s19 }
   0x5   :  { %36 = dma.hbm_to_vmem [thread:$0]  %s32_s17, 32, %s34_s19, [#allocation7]  }
   0x6   :  { %s19_s24 = sshll.u32 %s1345_s23, 4  ;;  %s1346_s25 = smov 128   ;;  %s20_s24 = int_to_ptr.vmem [resolvable:$true] %s19_s24 }
   0x7   :  { %s1347_s26 = smov 8   ;;  %s42_s1 = sshll.u32 %s1502_s2, 4  ;;  %s43_s1 = int_to_ptr.vmem [resolvable:$true] %s42_s1 }
   0x8   :  { %25 = dma.hbm_to_vmem [thread:$0]  %s18_s22, 256, %s20_s24, [#allocation3], %s1346_s25, %s1346_s25, %s1347_s26  }
   0x9   :  { %s50_s5 = sshll.u32 %s1503_s3, 4  ;;  %s1348_s6 = smov [#allocation8]   ;;  %s51_s5 = int_to_ptr.hbm [resolvable:$true] %s50_s5 }
   0xa   :  { %45 = dma.vmem_to_smem %s43_s1, 16, %s1348_s6, [#allocation5]  }
   0xb   :  { %s1349_s0 = smov [#allocation9]  }
   0xc   :  { %s52_s7 = sshll.u32 %s1349_s0, 4  ;;  %s53_s7 = int_to_ptr.vmem [resolvable:$true] %s52_s7 }
   0xd   :  { %58 = dma.hbm_to_vmem [thread:$0]  %s51_s5, 16128, %s53_s7, [#allocation7], %s1346_s25, %s1346_s25, %s1347_s26  }
   0xe   :  { %1334 = dma.done.wait [#allocation3], 256  }
   0xf   :  { %1335 = vsyncadd [#allocation3], 4294967040 }
  0x10   :  { %1336 = dma.done.wait [#allocation7], 32  }
  0x11   :  { %1337 = vsyncadd [#allocation7], 4294967264 }
  0x12   :  { %1338 = dma.done.wait [#allocation5], 16  }
  0x13   :  { %1339 = vsyncadd [#allocation5], 4294967280 }
  0x14   :  { %1340 = dma.done.wait [#allocation7], 16128  }
  0x15   :  { %1341 = vsyncadd [#allocation7], 4294951168 }
  0x16   :  { %75 = sfence }
  0x17   :  { %v81_v0 = vld [vmem:[#allocation9 + $0x18] sm:$0xff]  ;;  %v80_v1 = vld [vmem:[#allocation9 + $0x10] sm:$0xff]  ;;  %v79_v2 = vld [vmem:[#allocation9 + $0x8] sm:$0xff]  ;;  %vm84_vm0 = vcmask 261120   ;;  %vm124_vm1 = vcmask 523264   ;;  %vm156_vm2 = vcmask 130048  }
  0x18   :  { %103 = vmatpush.msra.mxu0 %v81_v0  ;;  %v121_v3 = vld [vmem:[#allocation9 + $0x58] sm:$0xff]  ;;  %v120_v4 = vld [vmem:[#allocation9 + $0x50] sm:$0xff]  ;;  %v78_v5 = vld [vmem:[#allocation9] sm:$0xff]  ;;  %s809_s2 = sld [smem:[#allocation8]]  ;;  %s1351_s12 = smov [#allocation10]  }
  0x19   :  { %v76_v6 = vld [vmem:[#allocation2] sm:$0xff]  ;;  %139 = vmatpush.msra.mxu1 %v121_v3  ;;  %v118_v8 = vld [vmem:[#allocation9 + $0x40] sm:$0xff]  ;;  %v117_v9 = vld [vmem:[#allocation9 + $0x38] sm:$0xff]  ;;  %s1160_s3 = sld [smem:[#allocation8 + $0x1]]  ;;  %s1113_s13 = sshll.u32 %s1351_s12, 4  ;;  %s1114_s13 = int_to_ptr.vmem [resolvable:$true] %s1113_s13 }
  0x1a   :  { %104 = vmatpush.msra.mxu0 %v80_v1  ;;  %v119_v7 = vld [vmem:[#allocation9 + $0x48] sm:$0xff]  ;;  %v116_v10 = vld [vmem:[#allocation9 + $0x30] sm:$0xff]  ;;  %v114_v13 = vld [vmem:[#allocation9 + $0x20] sm:$0xff]  ;;  %s1161_s8 = sld [smem:[#allocation8 + $0x2]]  ;;  %s1115_s16 = sshll.u32 %s1504_s4, 4  ;;  %s1116_s16 = int_to_ptr.hbm [resolvable:$true] %s1115_s16 }
  0x1b   :  { %140 = vmatpush.msra.mxu1 %v120_v4  ;;  %v77_v11 = vld [vmem:[#allocation2 + $0x8] sm:$0xff]  ;;  %v115_v12 = vld [vmem:[#allocation9 + $0x28] sm:$0xff]  ;;  %v487_v17 = vld [vmem:[#allocation9 + $0x180] sm:$0xff]  ;;  %s1162_s9 = sld [smem:[#allocation8 + $0x3]] }
  0x1c   :  { %105 = vmatpush.msra.mxu0 %v79_v2  ;;  %v490_v14 = vld [vmem:[#allocation9 + $0x198] sm:$0xff]  ;;  %v489_v15 = vld [vmem:[#allocation9 + $0x190] sm:$0xff]  ;;  %v488_v16 = vld [vmem:[#allocation9 + $0x188] sm:$0xff]  ;;  %s1164_s10 = sld [smem:[#allocation8 + $0x4]] }
  0x1d   :  { %141 = vmatpush.msra.mxu1 %v119_v7  ;;  %v486_v18 = vld [vmem:[#allocation9 + $0x178] sm:$0xff]  ;;  %v485_v19 = vld [vmem:[#allocation9 + $0x170] sm:$0xff]  ;;  %v484_v20 = vld [vmem:[#allocation9 + $0x168] sm:$0xff]  ;;  %s1165_s11 = sld [smem:[#allocation8 + $0x5]] }
  0x1e   :  { %106 = vmatpush.msra.mxu0 %v78_v5  ;;  %v483_v21 = vld [vmem:[#allocation9 + $0x160] sm:$0xff]  ;;  %v1182_v22 = vld [vmem:[#allocation9 + $0x3c8] ss:$0 sm:$0xff]  ;;  %v618_v25 = vld [vmem:[#allocation9 + $0x218] sm:$0xff] }
  0x1f   :  { %1127 = vmatmul.msk.f32.vlgmr.msra.gmra.mxu0 %vm84_vm0, %v76_v6  ;;  %142 = vmatpush.msra.mxu1 %v118_v8  ;;  %v617_v26 = vld [vmem:[#allocation9 + $0x210] sm:$0xff]  ;;  %v616_v27 = vld [vmem:[#allocation9 + $0x208] sm:$0xff]  ;;  %v615_v28 = vld [vmem:[#allocation9 + $0x200] sm:$0xff] }
  0x20   :  { %v614_v31 = vld [vmem:[#allocation9 + $0x1f8] sm:$0xff]  ;;  %v613_v32 = vld [vmem:[#allocation9 + $0x1f0] sm:$0xff]  ;;  %v612_v33 = vld [vmem:[#allocation9 + $0x1e8] sm:$0xff] }
  0x21   :  { %143 = vmatpush.msra.mxu1 %v117_v9  ;;  %v611_v34 = vld [vmem:[#allocation9 + $0x1e0] sm:$0xff]  ;;  %v1183_v36 = vld [vmem:[#allocation9 + $0x3c9] ss:$0 sm:$0xff]  ;;  %v363_v54 = vld [vmem:[#allocation9 + $0x98] sm:$0xff] }
  0x22   :  { %v154_v40 = vld [vmem:[#allocation9 + $0x2e0] sm:$0xff]  ;;  %v155_v41 = vld [vmem:[#allocation9 + $0x2e8] sm:$0xff]  ;;  %v362_v55 = vld [vmem:[#allocation9 + $0x90] sm:$0xff] }
  0x23   :  { %144 = vmatpush.msra.mxu1 %v116_v10  ;;  %v361_v56 = vld [vmem:[#allocation9 + $0x88] sm:$0xff]  ;;  %v360_v57 = vld [vmem:[#allocation9 + $0x80] sm:$0xff]  ;;  %v359_v58 = vld [vmem:[#allocation9 + $0x78] sm:$0xff] }
  0x24   :  { %v358_v59 = vld [vmem:[#allocation9 + $0x70] sm:$0xff]  ;;  %v357_v60 = vld [vmem:[#allocation9 + $0x68] sm:$0xff]  ;;  %v356_v61 = vld [vmem:[#allocation9 + $0x60] sm:$0xff] }
  0x25   :  { %145 = vmatpush.msra.mxu1 %v115_v12  ;;  %v556_v62 = vld [vmem:[#allocation9 + $0x1d8] sm:$0xff]  ;;  %v555_v63 = vld [vmem:[#allocation9 + $0x1d0] sm:$0xff]  ;;  %v554_v0 = vld [vmem:[#allocation9 + $0x1c8] sm:$0xff] }
  0x26   :  { %v553_v1 = vld [vmem:[#allocation9 + $0x1c0] sm:$0xff]  ;;  %v552_v2 = vld [vmem:[#allocation9 + $0x1b8] sm:$0xff]  ;;  %v551_v3 = vld [vmem:[#allocation9 + $0x1b0] sm:$0xff] }
  0x27   :  { %1128 = vmatmul.msk.f32.gmra.mxu0 %vm84_vm0, %v77_v11  ;;  %146 = vmatpush.msra.mxu1 %v114_v13  ;;  %v550_v4 = vld [vmem:[#allocation9 + $0x1a8] sm:$0xff]  ;;  %v549_v5 = vld [vmem:[#allocation9 + $0x1a0] sm:$0xff]  ;;  %v680_v6 = vld [vmem:[#allocation9 + $0x258] sm:$0xff] }
  0x28   :  { %v679_v7 = vld [vmem:[#allocation9 + $0x250] sm:$0xff]  ;;  %v678_v8 = vld [vmem:[#allocation9 + $0x248] sm:$0xff]  ;;  %v677_v9 = vld [vmem:[#allocation9 + $0x240] sm:$0xff] }
  0x29   :  { %503 = vmatpush.msrb.mxu1 %v490_v14  ;;  %v676_v10 = vld [vmem:[#allocation9 + $0x238] sm:$0xff]  ;;  %v675_v11 = vld [vmem:[#allocation9 + $0x230] sm:$0xff]  ;;  %v674_v12 = vld [vmem:[#allocation9 + $0x228] sm:$0xff] }
  0x2a   :  { %v673_v13 = vld [vmem:[#allocation9 + $0x220] sm:$0xff] }
  0x2b   :  { %504 = vmatpush.msrb.mxu1 %v489_v15 }
  0x2d   :  { %505 = vmatpush.msrb.mxu1 %v488_v16  ;;  %v1350_v16 = vmov 0  }
  0x2e   :  { %1180 = vset.pattern.permute.xlu0 %v1350_v16  ;;  %1181 = vset.pattern.permute.xlu1 %v1350_v16 }
  0x2f   :  { %506 = vmatpush.msrb.mxu1 %v487_v17  ;;  %v230_v17 = vld [vmem:[#allocation9 + $0x3d8] sm:$0xff]  ;;  %1179 = vset.pattern.permute.xlu2 %v1350_v16 }
  0x31   :  { %507 = vmatpush.msrb.mxu1 %v486_v18  ;;  %v229_v18 = vld [vmem:[#allocation9 + $0x3d0] sm:$0xff] }
  0x32   :  { %259 = vperm.xlu2 %1179, %v229_v18  }
  0x33   :  { %508 = vmatpush.msrb.mxu1 %v485_v19 }
  0x35   :  { %509 = vmatpush.msrb.mxu1 %v484_v20 }
  0x37   :  { %510 = vmatpush.msrb.mxu1 %v483_v21  ;;  %v231_v21 = vld [vmem:[#allocation9 + $0x3e0] sm:$0xff] }
  0x3a   :  { %271 = vperm.xlu2 %1179, %v231_v21  }
  0x9c   :  { %v108_v23 = vpop.f32.mrf.mxu0 }
  0x9d   :  { %v1391_v24 = vadd.f32 %v1182_v22, %v108_v23 }
  0x9f   :  { %1129 = vmatmul.msk.f32.vlgmr.msra.gmra.mxu1 %vm124_vm1, %v1391_v24 }
  0xa0   :  { %631 = vmatpush.msra.mxu1 %v618_v25 }
  0xa2   :  { %632 = vmatpush.msra.mxu1 %v617_v26 }
  0xa4   :  { %v111_v29 = vpop.f32.mrf.mxu0  ;;  %633 = vmatpush.msra.mxu1 %v616_v27 }
  0xa5   :  { %v1395_v30 = vadd.f32 %v1182_v22, %v111_v29  ;;  %v232_v22 = vld [vmem:[#allocation9 + $0x3e8] sm:$0xff] }
  0xa6   :  { %634 = vmatpush.msra.mxu1 %v615_v28 }
  0xa7   :  { %1130 = vmatmul.msk.f32.gmra.mxu1 %vm124_vm1, %v1395_v30 }
  0xa8   :  { %635 = vmatpush.msra.mxu1 %v614_v31 }
  0xaa   :  { %636 = vmatpush.msra.mxu1 %v613_v32 }
  0xac   :  { %637 = vmatpush.msra.mxu1 %v612_v33  ;;  %v260_v33 = vpop.permute.xlu2 %259 }
  0xae   :  { %638 = vmatpush.msra.mxu1 %v611_v34 }
  0xaf   :  { %1143 = vmatmul.msk.f32.vlgmr.msrb.gmra.mxu1 %vm124_vm1, %v1391_v24 }
  0xb7   :  { %1144 = vmatmul.msk.f32.gmra.mxu1 %vm124_vm1, %v1395_v30 }
  0xbf   :  { %1151 = vmatmul.msk.f32.vlgmr.msra.gmra.mxu1 %vm124_vm1, %v1391_v24 }
  0xc7   :  { %1152 = vmatmul.msk.f32.gmra.mxu1 %vm124_vm1, %v1395_v30 }
 0x11c   :  { %v148_v35 = vpop.f32.mrf.mxu1 }
 0x11d   :  { %v149_v39 = vadd.f32 %v1183_v36, %v148_v35 }
 0x124   :  { %v151_v37 = vpop.f32.mrf.mxu1 }
 0x125   :  { %v152_v38 = vadd.f32 %v1183_v36, %v151_v37 }
 0x127   :  { %177 = vmatpush.msra.mxu2 %v152_v38 }
 0x129   :  { %178 = vmatpush.msra.mxu2 %v149_v39 }
 0x12a   :  { %1131 = vmatmul.msk.f32.vlgmr.msra.gmra.mxu2 %vm156_vm2, %v154_v40 }
 0x132   :  { %1132 = vmatmul.msk.f32.gmra.mxu2 %vm156_vm2, %v155_v41 }
 0x1ad   :  { %v180_v42 = vpop.f32.mrf.mxu2 }
 0x1ae   :  { %v186_v45 = vsel %vm84_vm0, %v180_v42, 0.0 }
 0x1b5   :  { %v183_v43 = vpop.f32.mrf.mxu2 }
 0x1b6   :  { %v189_v44 = vsel %vm84_vm0, %v183_v43, 0.0 }
 0x1b7   :  { %190 = vadd.xlane.f32.xlu0 %v189_v44  ;;  %v272_v44 = vpop.permute.xlu2 %271 }
 0x1bf   :  { %187 = vadd.xlane.f32.xlu0 %v186_v45 }
 0x1d3   :  { %264 = vperm.xlu0 %1180, %v230_v17  }
 0x22a   :  { %v191_v46 = vpop.xlane.xlu0 %190 }
 0x22b   :  { %v193_v47 = vmul.f32 0.015625, %v191_v46 }
 0x22d   :  { %v1411_v48 = vsub.f32 %v152_v38, %v193_v47 }
 0x22f   :  { %v197_v49 = vmul.f32 %v1411_v48, %v1411_v48 }
 0x231   :  { %212 = vmatpush.msra.mxu3 %v197_v49 }
 0x232   :  { %v188_v50 = vpop.xlane.xlu0 %187 }
 0x233   :  { %v192_v51 = vmul.f32 0.015625, %v188_v50 }
 0x235   :  { %v1415_v52 = vsub.f32 %v149_v39, %v192_v51 }
 0x237   :  { %v196_v53 = vmul.f32 %v1415_v52, %v1415_v52 }
 0x239   :  { %213 = vmatpush.msra.mxu3 %v196_v53 }
 0x23a   :  { %1133 = vmatmul.msk.f32.vlgmr.msra.gmra.mxu3 %vm156_vm2, %v154_v40 }
 0x23b   :  { %374 = vmatpush.msrb.mxu3 %v363_v54 }
 0x23d   :  { %375 = vmatpush.msrb.mxu3 %v362_v55 }
 0x23f   :  { %376 = vmatpush.msrb.mxu3 %v361_v56  ;;  %v284_v56 = vld [vmem:[#allocation9 + $0xb8] sm:$0xff] }
 0x240   :  { %315 = vmatpush.msrb.mxu2 %v284_v56 }
 0x241   :  { %377 = vmatpush.msrb.mxu3 %v360_v57  ;;  %v283_v57 = vld [vmem:[#allocation9 + $0xb0] sm:$0xff] }
 0x242   :  { %1134 = vmatmul.msk.f32.gmra.mxu3 %vm156_vm2, %v155_v41  ;;  %316 = vmatpush.msrb.mxu2 %v283_v57 }
 0x243   :  { %378 = vmatpush.msrb.mxu3 %v359_v58  ;;  %v282_v58 = vld [vmem:[#allocation9 + $0xa8] sm:$0xff] }
 0x244   :  { %317 = vmatpush.msrb.mxu2 %v282_v58 }
 0x245   :  { %379 = vmatpush.msrb.mxu3 %v358_v59  ;;  %v265_v50 = vpop.permute.xlu0 %264  ;;  %v281_v59 = vld [vmem:[#allocation9 + $0xa0] sm:$0xff] }
 0x246   :  { %318 = vmatpush.msrb.mxu2 %v281_v59 }
 0x247   :  { %380 = vmatpush.msrb.mxu3 %v357_v60 }
 0x249   :  { %381 = vmatpush.msrb.mxu3 %v356_v61 }
 0x24a   :  { %1137 = vmatmul.msk.f32.vlgmr.msrb.gmra.mxu3 %vm124_vm1, %v1391_v24 }
 0x24b   :  { %569 = vmatpush.msra.mxu3 %v556_v62 }
 0x24d   :  { %570 = vmatpush.msra.mxu3 %v555_v63 }
 0x24f   :  { %571 = vmatpush.msra.mxu3 %v554_v0 }
 0x251   :  { %572 = vmatpush.msra.mxu3 %v553_v1 }
 0x252   :  { %1138 = vmatmul.msk.f32.gmra.mxu3 %vm124_vm1, %v1395_v30 }
 0x253   :  { %573 = vmatpush.msra.mxu3 %v552_v2 }
 0x255   :  { %574 = vmatpush.msra.mxu3 %v551_v3 }
 0x257   :  { %575 = vmatpush.msra.mxu3 %v550_v4  ;;  %v1184_v4 = vld [vmem:[#allocation9 + $0x3ca] ss:$0 sm:$0xff] }
 0x259   :  { %576 = vmatpush.msra.mxu3 %v549_v5 }
 0x25a   :  { %1147 = vmatmul.msk.f32.vlgmr.msra.gmra.mxu3 %vm124_vm1, %v1391_v24 }
 0x25b   :  { %693 = vmatpush.msrb.mxu3 %v680_v6 }
 0x25d   :  { %694 = vmatpush.msrb.mxu3 %v679_v7 }
 0x25f   :  { %695 = vmatpush.msrb.mxu3 %v678_v8 }
 0x261   :  { %696 = vmatpush.msrb.mxu3 %v677_v9 }
 0x262   :  { %1148 = vmatmul.msk.f32.gmra.mxu3 %vm124_vm1, %v1395_v30 }
 0x263   :  { %697 = vmatpush.msrb.mxu3 %v676_v10  ;;  %v494_v10 = vld [vmem:[#allocation9 + $0xf8] sm:$0xff] }
 0x264   :  { %536 = vmatpush.msra.mxu2 %v494_v10  ;;  %v560_v10 = vld [vmem:[#allocation9 + $0x118] sm:$0xff] }
 0x265   :  { %698 = vmatpush.msrb.mxu3 %v675_v11 }
 0x267   :  { %699 = vmatpush.msrb.mxu3 %v674_v12  ;;  %v493_v12 = vld [vmem:[#allocation9 + $0xf0] sm:$0xff] }
 0x268   :  { %537 = vmatpush.msra.mxu2 %v493_v12  ;;  %v558_v12 = vld [vmem:[#allocation9 + $0x108] sm:$0xff] }
 0x269   :  { %700 = vmatpush.msrb.mxu3 %v673_v13  ;;  %v492_v13 = vld [vmem:[#allocation9 + $0xe8] sm:$0xff] }
 0x26a   :  { %1155 = vmatmul.msk.f32.vlgmr.msrb.gmra.mxu3 %vm124_vm1, %v1391_v24  ;;  %538 = vmatpush.msra.mxu2 %v492_v13  ;;  %v557_v13 = vld [vmem:[#allocation9 + $0x100] sm:$0xff] }
 0x272   :  { %1156 = vmatmul.msk.f32.gmra.mxu3 %vm124_vm1, %v1395_v30 }
 0x2bd   :  { %v215_v14 = vpop.f32.mrf.mxu3 }
 0x2be   :  { %v221_v15 = vsel %vm84_vm0, %v215_v14, 0.0 }
 0x2bf   :  { %222 = vadd.xlane.f32.xlu1 %v221_v15  ;;  %v491_v15 = vld [vmem:[#allocation9 + $0xe0] sm:$0xff] }
 0x2c0   :  { %539 = vmatpush.msra.mxu2 %v491_v15 }
 0x2c5   :  { %v218_v19 = vpop.f32.mrf.mxu3 }
 0x2c6   :  { %v224_v20 = vsel %vm84_vm0, %v218_v19, 0.0  ;;  %v622_v19 = vld [vmem:[#allocation9 + $0x138] sm:$0xff] }
 0x2c7   :  { %225 = vadd.xlane.f32.xlu1 %v224_v20 }
 0x2cd   :  { %v383_v3 = vpop.f32.mrf.mxu3 }
 0x2ce   :  { %v384_v5 = vadd.f32 %v1184_v4, %v383_v3 }
 0x2d0   :  { %v1139_v6 = vmul.f32 -1.442695, %v384_v5 }
 0x2d5   :  { %v386_v7 = vpop.f32.mrf.mxu3 }
 0x2d6   :  { %v387_v8 = vadd.f32 %v1184_v4, %v386_v7  ;;  %v433_v7 = vld [vmem:[#allocation9 + $0xd8] sm:$0xff] }
 0x2d8   :  { %v1140_v9 = vmul.f32 -1.442695, %v387_v8  ;;  %v432_v8 = vld [vmem:[#allocation9 + $0xd0] sm:$0xff] }
 0x2e0   :  { %276 = vperm.xlu1 %1181, %v232_v22   ;;  %v621_v22 = vld [vmem:[#allocation9 + $0x130] sm:$0xff] }
 0x332   :  { %v223_v23 = vpop.xlane.xlu1 %222 }
 0x333   :  { %v227_v24 = vmul.f32 0.015625, %v223_v23  ;;  %v620_v23 = vld [vmem:[#allocation9 + $0x128] sm:$0xff] }
 0x335   :  { %v233_v25 = vadd.f32 1e-05, %v227_v24  ;;  %v619_v24 = vld [vmem:[#allocation9 + $0x120] sm:$0xff] }
 0x337   :  { %1190 = vrsqrt.f32 %v233_v25  ;;  %vm241_vm4 = vweird.f32 %v233_v25 }
 0x33a   :  { %v226_v26 = vpop.xlane.xlu1 %225 }
 0x33b   :  { %v228_v27 = vmul.f32 0.015625, %v226_v26 }
 0x33d   :  { %v1191_v28 = vpop.eup %1190  ;;  %v234_v29 = vadd.f32 1e-05, %v228_v27 }
 0x33e   :  { %v236_v30 = vmul.f32 %v1191_v28, %v233_v25  ;;  %vm242_vm3 = vweird.f32 %v1191_v28 }
 0x33f   :  { %1192 = vrsqrt.f32 %v234_v29  ;;  %vm243_vm5 = vmor %vm241_vm4, %vm242_vm3  ;;  %vm251_vm7 = vweird.f32 %v234_v29 }
 0x340   :  { %v237_v31 = vmul.f32 %v1191_v28, %v236_v30 }
 0x342   :  { %v238_v32 = vmul.f32 0.5, %v237_v31 }
 0x344   :  { %v239_v34 = vsub.f32 1.5, %v238_v32 }
 0x345   :  { %v1193_v35 = vpop.eup %1192 }
 0x346   :  { %v246_v36 = vmul.f32 %v1193_v35, %v234_v29  ;;  %v240_v37 = vmul.f32 %v1191_v28, %v239_v34  ;;  %vm252_vm6 = vweird.f32 %v1193_v35 }
 0x347   :  { %vm253_vm8 = vmor %vm251_vm7, %vm252_vm6 }
 0x348   :  { %v247_v38 = vmul.f32 %v1193_v35, %v246_v36  ;;  %v244_v39 = vsel %vm243_vm5, %v1191_v28, %v240_v37 }
 0x349   :  { %v255_v40 = vmul.f32 %v244_v39, %v1415_v52  ;;  %v763_v39 = vld [vmem:[#allocation9 + $0x298] sm:$0xff] }
 0x34a   :  { %v248_v41 = vmul.f32 0.5, %v247_v38 }
 0x34b   :  { %v267_v42 = vmul.f32 %v260_v33, %v255_v40 }
 0x34c   :  { %v249_v43 = vsub.f32 1.5, %v248_v41 }
 0x34d   :  { %v279_v45 = vadd.f32 %v272_v44, %v267_v42 }
 0x34e   :  { %v250_v46 = vmul.f32 %v1193_v35, %v249_v43 }
 0x34f   :  { %v285_v47 = vsel %vm84_vm0, %v279_v45, -inf }
 0x350   :  { %286 = vmax.xlane.f32.xlu2 %v285_v47  ;;  %v254_v49 = vsel %vm253_vm8, %v1193_v35, %v250_v46 }
 0x351   :  { %v256_v51 = vmul.f32 %v254_v49, %v1411_v48 }
 0x352   :  { %v277_v53 = vpop.permute.xlu1 %276 }
 0x353   :  { %v268_v54 = vmul.f32 %v265_v50, %v256_v51 }
 0x355   :  { %v280_v55 = vadd.f32 %v277_v53, %v268_v54 }
 0x357   :  { %v288_v52 = vsel %vm84_vm0, %v280_v55, -inf }
 0x358   :  { %289 = vmax.xlane.f32.xlu1 %v288_v52 }
 0x3c3   :  { %v287_v60 = vpop.xlane.xlu2 %286 }
 0x3c4   :  { %v291_v61 = vsub.f32 %v279_v45, %v287_v60 }
 0x3c6   :  { %v293_v62 = vmul.f32 1.442695, %v291_v61 }
 0x3c8   :  { %1194 = vpow2.f32 %v293_v62 }
 0x3cb   :  { %v290_v63 = vpop.xlane.xlu1 %289 }
 0x3cc   :  { %v292_v48 = vsub.f32 %v280_v55, %v290_v63 }
 0x3ce   :  { %v1439_v0 = vpop.eup %1194  ;;  %v295_v1 = vmul.f32 1.442695, %v292_v48 }
 0x3cf   :  { %1135 = vmatmul.msk.f32.vlgmr.msrb.gmra.mxu2 %vm84_vm0, %v1439_v0 }
 0x3d0   :  { %1196 = vpow2.f32 %v295_v1  ;;  %658 = vmatpush.msrb.mxu2 %v622_v19 }
 0x3d1   :  { %1198 = vpow2.f32 %v1139_v6  ;;  %v1464_v6 = vld [vmem:[#allocation9 + $0x2f0] sm:$0x3] }
 0x3d2   :  { %1200 = vpow2.f32 %v1140_v9  ;;  %659 = vmatpush.msrb.mxu2 %v621_v22  ;;  %v430_v9 = vld [vmem:[#allocation9 + $0xc0] sm:$0xff]  ;;  %v578_v22 = vpop.f32.mrf.mxu3 }
 0x3d4   :  { %660 = vmatpush.msrb.mxu2 %v620_v23 }
 0x3d6   :  { %v1443_v2 = vpop.eup %1196  ;;  %661 = vmatpush.msrb.mxu2 %v619_v24 }
 0x3d7   :  { %1136 = vmatmul.msk.f32.gmra.mxu2 %vm84_vm0, %v1443_v2  ;;  %v1199_v11 = vpop.eup %1198 }
 0x3d8   :  { %v395_v14 = vadd.f32 1.0, %v1199_v11  ;;  %v1201_v16 = vpop.eup %1200  ;;  %v559_v11 = vld [vmem:[#allocation9 + $0x110] sm:$0xff] }
 0x3d9   :  { %v1447_v17 = vadd.f32 1.0, %v1201_v16  ;;  %v683_v16 = vld [vmem:[#allocation9 + $0x150] sm:$0xff] }
 0x3da   :  { %1202 = vrcp.f32 %v395_v14  ;;  %vm402_vm11 = vweird.f32 %v395_v14  ;;  %v408_v38 = vand.u32 2147483648, %v395_v14  ;;  %v406_v41 = vand.u32 2147483647, %v395_v14 }
 0x3db   :  { %1204 = vrcp.f32 %v1447_v17  ;;  %vm417_vm5 = vweird.f32 %v1447_v17  ;;  %v423_v59 = vand.u32 2147483648, %v1447_v17  ;;  %v421_v61 = vand.u32 2147483647, %v1447_v17 }
 0x3dc   :  { %v409_v49 = vor.u32 1.1754944e-38, %v408_v38  ;;  %vm407_vm1 = vcmp.eq.f32.partialorder %v406_v41, 8.507059e+37  ;;  %v762_v41 = vld [vmem:[#allocation9 + $0x290] sm:$0xff] }
 0x3e0   :  { %v1203_v18 = vpop.eup %1202 }
 0x3e1   :  { %v398_v20 = vmul.f32 %v1203_v18, %v395_v14  ;;  %v1205_v25 = vpop.eup %1204  ;;  %vm403_vm9 = vweird.f32 %v1203_v18  ;;  %v684_v14 = vld [vmem:[#allocation9 + $0x158] sm:$0xff] }
 0x3e2   :  { %v413_v28 = vmul.f32 %v1205_v25, %v1447_v17  ;;  %vm1451_vm12 = vmor %vm402_vm11, %vm403_vm9  ;;  %vm418_vm3 = vweird.f32 %v1205_v25  ;;  %v682_v17 = vld [vmem:[#allocation9 + $0x148] sm:$0xff] }
 0x3e3   :  { %v399_v26 = vsub.f32 1.0, %v398_v20  ;;  %vm419_vm6 = vmor %vm417_vm5, %vm418_vm3  ;;  %v512_v20 = vpop.f32.mrf.mxu1 }
 0x3e4   :  { %v414_v33 = vsub.f32 1.0, %v413_v28  ;;  %v769_v28 = vld [vmem:[#allocation9 + $0x2c8] sm:$0xff] }
 0x3e5   :  { %v400_v29 = vmul.f32 %v1203_v18, %v399_v26  ;;  %v770_v26 = vld [vmem:[#allocation9 + $0x2d0] sm:$0xff] }
 0x3e6   :  { %v415_v43 = vmul.f32 %v1205_v25, %v414_v33  ;;  %v766_v33 = vld [vmem:[#allocation9 + $0x2b0] sm:$0xff] }
 0x3e7   :  { %v401_v37 = vadd.f32 %v1203_v18, %v400_v29  ;;  %v581_v29 = vpop.f32.mrf.mxu3 }
 0x3e8   :  { %v416_v52 = vadd.f32 %v1205_v25, %v415_v43  ;;  %v761_v43 = vld [vmem:[#allocation9 + $0x288] sm:$0xff] }
 0x3e9   :  { %v405_v47 = vsel %vm1451_vm12, %v1203_v18, %v401_v37  ;;  %v681_v18 = vld [vmem:[#allocation9 + $0x140] sm:$0xff] }
 0x3ea   :  { %v410_v55 = vsel %vm407_vm1, %v409_v49, %v405_v47  ;;  %v420_v48 = vsel %vm419_vm6, %v1205_v25, %v416_v52  ;;  %v771_v25 = vld [vmem:[#allocation9 + $0x2d8] sm:$0xff]  ;;  %v764_v37 = vld [vmem:[#allocation9 + $0x2a0] sm:$0xff] }
 0x3eb   :  { %v760_v47 = vld [vmem:[#allocation9 + $0x280] sm:$0xff] }
 0x3ef   :  { %v702_v38 = vpop.f32.mrf.mxu3 }
 0x3f7   :  { %v705_v52 = vpop.f32.mrf.mxu3 }
 0x452   :  { %v320_v21 = vpop.f32.mrf.mxu2 }
 0x453   :  { %1206 = vrcp.f32 %v320_v21  ;;  %v337_v34 = vand.u32 2147483648, %v320_v21  ;;  %v335_v36 = vand.u32 2147483647, %v320_v21  ;;  %vm331_vm13 = vweird.f32 %v320_v21 }
 0x455   :  { %v338_v44 = vor.u32 1.1754944e-38, %v337_v34  ;;  %vm336_vm15 = vcmp.eq.f32.partialorder %v335_v36, 8.507059e+37 }
 0x459   :  { %v1207_v27 = vpop.eup %1206 }
 0x45a   :  { %v327_v30 = vmul.f32 %v1207_v27, %v320_v21  ;;  %v323_v31 = vpop.f32.mrf.mxu2  ;;  %vm332_vm10 = vweird.f32 %v1207_v27 }
 0x45b   :  { %1208 = vrcp.f32 %v323_v31  ;;  %vm333_vm14 = vmor %vm331_vm13, %vm332_vm10  ;;  %v352_v54 = vand.u32 2147483648, %v323_v31  ;;  %v350_v57 = vand.u32 2147483647, %v323_v31  ;;  %vm346_vm7 = vweird.f32 %v323_v31 }
 0x45c   :  { %v328_v32 = vsub.f32 1.0, %v327_v30  ;;  %vm422_vm10 = vcmp.eq.f32.partialorder %v421_v61, 8.507059e+37  ;;  %v768_v30 = vld [vmem:[#allocation9 + $0x2c0] sm:$0xff] }
 0x45d   :  { %v353_v62 = vor.u32 1.1754944e-38, %v352_v54  ;;  %vm351_vm9 = vcmp.eq.f32.partialorder %v350_v57, 8.507059e+37 }
 0x45e   :  { %v329_v35 = vmul.f32 %v1207_v27, %v328_v32 }
 0x460   :  { %v330_v40 = vadd.f32 %v1207_v27, %v329_v35  ;;  %v765_v35 = vld [vmem:[#allocation9 + $0x2a8] sm:$0xff] }
 0x461   :  { %v1209_v42 = vpop.eup %1208 }
 0x462   :  { %v334_v45 = vsel %vm333_vm14, %v1207_v27, %v330_v40  ;;  %v342_v46 = vmul.f32 %v1209_v42, %v323_v31  ;;  %vm347_vm4 = vweird.f32 %v1209_v42  ;;  %v515_v27 = vpop.f32.mrf.mxu1  ;;  %v767_v31 = vld [vmem:[#allocation9 + $0x2b8] sm:$0xff]  ;;  %vm811_vm14 = vcmask 1041408  }
 0x463   :  { %v339_v50 = vsel %vm336_vm15, %v338_v44, %v334_v45  ;;  %vm348_vm8 = vmor %vm346_vm7, %vm347_vm4  ;;  %vm894_vm4 = vcmask 254976  }
 0x464   :  { %v340_v51 = vmul.f32 %v1439_v0, %v339_v50  ;;  %v343_v53 = vsub.f32 1.0, %v342_v46  ;;  %v424_v0 = vor.u32 1.1754944e-38, %v423_v59 }
 0x466   :  { %v344_v56 = vmul.f32 %v1209_v42, %v343_v53  ;;  %v427_v58 = vmul.f32 %v410_v55, %v340_v51  ;;  %v425_v4 = vsel %vm422_vm10, %v424_v0, %v420_v48  ;;  %v759_v53 = vld [vmem:[#allocation9 + $0x278] sm:$0xff]  ;;  %v758_v48 = vld [vmem:[#allocation9 + $0x270] sm:$0xff]  ;;  %v757_v0 = vld [vmem:[#allocation9 + $0x268] sm:$0xff] }
 0x468   :  { %v345_v60 = vadd.f32 %v1209_v42, %v344_v56  ;;  %1145 = vmatmul.msk.f32.vlgmr.msra.gmra.mxu2 %vm84_vm0, %v427_v58 }
 0x469   :  { %773 = vmatpush.msra.mxu2 %v771_v25 }
 0x46a   :  { %v349_v63 = vsel %vm348_vm8, %v1209_v42, %v345_v60  ;;  %v640_v36 = vpop.f32.mrf.mxu1  ;;  %vm967_vm8 = vcmask 25600  }
 0x46b   :  { %v354_v1 = vsel %vm351_vm9, %v353_v62, %v349_v63  ;;  %774 = vmatpush.msra.mxu2 %v770_v26  ;;  %vm1015_vm9 = vcmask 1043456  }
 0x46c   :  { %v355_v3 = vmul.f32 %v1443_v2, %v354_v1  ;;  %v431_v2 = vld [vmem:[#allocation9 + $0xc8] sm:$0xff]  ;;  %v756_v1 = vld [vmem:[#allocation9 + $0x260] sm:$0xff] }
 0x46d   :  { %775 = vmatpush.msra.mxu2 %v769_v28 }
 0x46e   :  { %v428_v5 = vmul.f32 %v425_v4, %v355_v3  ;;  %v1185_v3 = vld [vmem:[#allocation9 + $0x3c0] ss:$0 sm:$0xff] }
 0x46f   :  { %776 = vmatpush.msra.mxu2 %v768_v30 }
 0x470   :  { %451 = vmatpush.msrb.mxu0 %v428_v5  ;;  %1146 = vmatmul.msk.f32.gmra.mxu2 %vm84_vm0, %v428_v5 }
 0x471   :  { %777 = vmatpush.msra.mxu2 %v767_v31 }
 0x472   :  { %452 = vmatpush.msrb.mxu0 %v427_v58  ;;  %v643_v51 = vpop.f32.mrf.mxu1 }
 0x473   :  { %1141 = vmatmul.msk.f32.vlgmr.msrb.gmra.mxu0 %vm156_vm2, %v1464_v6  ;;  %778 = vmatpush.msra.mxu2 %v766_v33  ;;  %v869_v33 = vld [vmem:[#allocation9 + $0x370] sm:$0xff] }
 0x474   :  { %472 = vmatpush.msra.mxu0 %v433_v7  ;;  %872 = vmatpush.msra.mxu3 %v869_v33 }
 0x475   :  { %779 = vmatpush.msra.mxu2 %v765_v35  ;;  %v867_v35 = vld [vmem:[#allocation9 + $0x360] sm:$0xff] }
 0x476   :  { %473 = vmatpush.msra.mxu0 %v432_v8 }
 0x477   :  { %780 = vmatpush.msra.mxu2 %v764_v37  ;;  %v865_v37 = vld [vmem:[#allocation9 + $0x350] sm:$0xff] }
 0x478   :  { %1153 = vmatmul.msk.f32.vlgmr.msrb.gmra.mxu2 %vm84_vm0, %v427_v58  ;;  %474 = vmatpush.msra.mxu0 %v431_v2 }
 0x479   :  { %781 = vmatpush.msra.mxu2 %v763_v39  ;;  %v863_v39 = vld [vmem:[#allocation9 + $0x340] sm:$0xff] }
 0x47a   :  { %475 = vmatpush.msra.mxu0 %v430_v9 }
 0x47b   :  { %782 = vmatpush.msra.mxu2 %v762_v41  ;;  %v861_v41 = vld [vmem:[#allocation9 + $0x330] sm:$0xff] }
 0x47c   :  { %596 = vmatpush.msrb.mxu0 %v560_v10 }
 0x47d   :  { %783 = vmatpush.msra.mxu2 %v761_v43 }
 0x47e   :  { %597 = vmatpush.msrb.mxu0 %v559_v11 }
 0x47f   :  { %784 = vmatpush.msra.mxu2 %v760_v47  ;;  %v858_v47 = vld [vmem:[#allocation9 + $0x318] sm:$0xff] }
 0x480   :  { %1154 = vmatmul.msk.f32.gmra.mxu2 %vm84_vm0, %v428_v5  ;;  %598 = vmatpush.msrb.mxu0 %v558_v12 }
 0x481   :  { %785 = vmatpush.msra.mxu2 %v759_v53 }
 0x482   :  { %599 = vmatpush.msrb.mxu0 %v557_v13 }
 0x483   :  { %786 = vmatpush.msra.mxu2 %v758_v48 }
 0x485   :  { %787 = vmatpush.msra.mxu2 %v757_v0 }
 0x487   :  { %788 = vmatpush.msra.mxu2 %v756_v1 }
 0x4eb   :  { %v541_v19 = vpop.f32.mrf.mxu2 }
 0x4ec   :  { %v547_v49 = vmul.f32 %v541_v19, %v512_v20 }
 0x4f0   :  { %v454_v15 = vpop.f32.mrf.mxu0 }
 0x4f1   :  { %1142 = vmatmul.msk.f32.vlgmr.msra.gmra.mxu0 %vm84_vm0, %v454_v15 }
 0x4f2   :  { %720 = vmatpush.msra.mxu0 %v684_v14 }
 0x4f3   :  { %v544_v23 = vpop.f32.mrf.mxu2 }
 0x4f4   :  { %721 = vmatpush.msra.mxu0 %v683_v16  ;;  %v548_v44 = vmul.f32 %v544_v23, %v515_v27 }
 0x4f6   :  { %722 = vmatpush.msra.mxu0 %v682_v17 }
 0x4f8   :  { %723 = vmatpush.msra.mxu0 %v681_v18 }
 0x4f9   :  { %1149 = vmatmul.msk.f32.vlgmr.msrb.gmra.mxu0 %vm84_vm0, %v427_v58 }
 0x4fb   :  { %v663_v34 = vpop.f32.mrf.mxu2 }
 0x4fc   :  { %v669_v57 = vmul.f32 %v663_v34, %v640_v36  ;;  %v868_v34 = vld [vmem:[#allocation9 + $0x368] sm:$0xff]  ;;  %v866_v36 = vld [vmem:[#allocation9 + $0x358] sm:$0xff] }
 0x4fd   :  { %873 = vmatpush.msra.mxu3 %v868_v34  ;;  %v936_v34 = vld [vmem:[#allocation9 + $0x378] sm:$0xff] }
 0x4ff   :  { %874 = vmatpush.msra.mxu3 %v867_v35 }
 0x501   :  { %1150 = vmatmul.msk.f32.gmra.mxu0 %vm84_vm0, %v428_v5  ;;  %875 = vmatpush.msra.mxu3 %v866_v36 }
 0x503   :  { %v666_v46 = vpop.f32.mrf.mxu2  ;;  %876 = vmatpush.msra.mxu3 %v865_v37 }
 0x504   :  { %v670_v54 = vmul.f32 %v666_v46, %v643_v51  ;;  %v856_v51 = vld [vmem:[#allocation9 + $0x308] sm:$0xff] }
 0x509   :  { %1157 = vmatmul.msk.f32.vlgmr.msra.gmra.mxu0 %vm84_vm0, %v427_v58 }
 0x511   :  { %1158 = vmatmul.msk.f32.gmra.mxu0 %vm84_vm0, %v428_v5 }
 0x56e   :  { %v1475_v21 = vpop.f32.mrf.mxu0 }
 0x56f   :  { %v482_v4 = vmul.f32 %v1185_v3, %v1475_v21  ;;  %v848_v3 = vstv %s809_s2 }
 0x576   :  { %v601_v24 = vpop.f32.mrf.mxu0 }
 0x577   :  { %v607_v45 = vmul.f32 %v601_v24, %v578_v22 }
 0x579   :  { %v609_v55 = vadd.f32 %v607_v45, %v547_v49  ;;  %v857_v49 = vld [vmem:[#allocation9 + $0x310] sm:$0xff] }
 0x57b   :  { %v671_v61 = vadd.f32 %v669_v57, %v609_v55 }
 0x57e   :  { %v604_v32 = vpop.f32.mrf.mxu0 }
 0x57f   :  { %v608_v42 = vmul.f32 %v604_v32, %v581_v29 }
 0x581   :  { %v610_v50 = vadd.f32 %v608_v42, %v548_v44  ;;  %v860_v42 = vld [vmem:[#allocation9 + $0x328] sm:$0xff]  ;;  %v859_v44 = vld [vmem:[#allocation9 + $0x320] sm:$0xff] }
 0x583   :  { %v672_v59 = vadd.f32 %v670_v54, %v610_v50  ;;  %v855_v54 = vld [vmem:[#allocation9 + $0x300] sm:$0xff] }
 0x586   :  { %v725_v40 = vpop.f32.mrf.mxu0 }
 0x587   :  { %v731_v58 = vmul.f32 %v725_v40, %v702_v38  ;;  %v864_v38 = vld [vmem:[#allocation9 + $0x348] sm:$0xff]  ;;  %v862_v40 = vld [vmem:[#allocation9 + $0x338] sm:$0xff] }
 0x588   :  { %877 = vmatpush.msra.mxu3 %v864_v38 }
 0x589   :  { %v733_v63 = vadd.f32 %v731_v58, %v671_v61 }
 0x58a   :  { %878 = vmatpush.msra.mxu3 %v863_v39 }
 0x58c   :  { %879 = vmatpush.msra.mxu3 %v862_v40 }
 0x58e   :  { %v728_v56 = vpop.f32.mrf.mxu0  ;;  %880 = vmatpush.msra.mxu3 %v861_v41 }
 0x58f   :  { %v732_v60 = vmul.f32 %v728_v56, %v705_v52  ;;  %v854_v52 = vld [vmem:[#allocation9 + $0x2f8] sm:$0xff] }
 0x590   :  { %881 = vmatpush.msra.mxu3 %v860_v42 }
 0x591   :  { %v734_v62 = vadd.f32 %v732_v60, %v672_v59 }
 0x592   :  { %882 = vmatpush.msra.mxu3 %v859_v44 }
 0x593   :  { %749 = vmatpush.msrb.mxu1 %v734_v62 }
 0x594   :  { %883 = vmatpush.msra.mxu3 %v858_v47 }
 0x595   :  { %750 = vmatpush.msrb.mxu1 %v733_v63 }
 0x596   :  { %1159 = vmatmul.msk.f32.vlgmr.msrb.gmra.mxu1 %vm156_vm2, %v1464_v6  ;;  %884 = vmatpush.msra.mxu3 %v857_v49  ;;  %v933_v49 = vstv %s1162_s9 }
 0x598   :  { %885 = vmatpush.msra.mxu3 %v856_v51 }
 0x59a   :  { %886 = vmatpush.msra.mxu3 %v855_v54  ;;  %v1187_v54 = vld [vmem:[#allocation9 + $0x3cc] ss:$0 sm:$0xff] }
 0x59c   :  { %887 = vmatpush.msra.mxu3 %v854_v52 }
 0x613   :  { %v752_v5 = vpop.f32.mrf.mxu1 }
 0x614   :  { %v755_v7 = vsub.f32 %v752_v5, %v482_v4  ;;  %v850_v5 = vstv %s1160_s3 }
 0x616   :  { %v772_v8 = vand.u32 2147483647, %v755_v7 }
 0x618   :  { %789 = vmatmul.f32.vlgmr.msra.gmra.mxu2 %v772_v8  ;;  %v852_v8 = vld [vmem:[#allocation6] sm:$0x3] }
 0x69b   :  { %v790_v2 = vpop.f32.mrf.mxu2 }
 0x69c   :  { %v793_v9 = vmax.f32 %v790_v2, 1e-12 }
 0x69e   :  { %1210 = vrcp.f32 %v793_v9  ;;  %v805_v6 = vand.u32 2147483648, %v793_v9  ;;  %v803_v14 = vand.u32 2147483647, %v793_v9  ;;  %vm799_vm11 = vweird.f32 %v793_v9 }
 0x6a0   :  { %v806_v16 = vor.u32 1.1754944e-38, %v805_v6  ;;  %vm804_vm13 = vcmp.eq.f32.partialorder %v803_v14, 8.507059e+37 }
 0x6a4   :  { %v1211_v10 = vpop.eup %1210 }
 0x6a5   :  { %v795_v11 = vmul.f32 %v1211_v10, %v793_v9  ;;  %vm800_vm2 = vweird.f32 %v1211_v10 }
 0x6a6   :  { %vm801_vm12 = vmor %vm799_vm11, %vm800_vm2 }
 0x6a7   :  { %v796_v12 = vsub.f32 1.0, %v795_v11 }
 0x6a9   :  { %v797_v13 = vmul.f32 %v1211_v10, %v796_v12 }
 0x6ab   :  { %v798_v15 = vadd.f32 %v1211_v10, %v797_v13 }
 0x6ad   :  { %v802_v17 = vsel %vm801_vm12, %v1211_v10, %v798_v15  ;;  %v1186_v10 = vld [vmem:[#allocation9 + $0x3cb] ss:$0 sm:$0xff]  ;;  %vm1011_vm12 = vcmask 31744  }
 0x6ae   :  { %v807_v18 = vsel %vm804_vm13, %v806_v16, %v802_v17 }
 0x6af   :  { %v808_v19 = vmul.f32 %v807_v18, %v755_v7 }
 0x6b1   :  { %v812_v20 = vsel %vm811_vm14, %v808_v19, 0.0 }
 0x6b2   :  { %813 = vadd.xlane.f32.xlu0 %v812_v20 }
 0x725   :  { %v814_v21 = vpop.xlane.xlu0 %813 }
 0x726   :  { %v815_v22 = vsel %vm811_vm14, %v814_v21, 0.0 }
 0x727   :  { %v816_v23 = vrot.slane %v815_v22, 4 }
 0x729   :  { %v817_v24 = vadd.f32 %v816_v23, %v815_v22 }
 0x72b   :  { %v818_v25 = vrot.slane %v817_v24, 2 }
 0x72d   :  { %v819_v26 = vadd.f32 %v818_v25, %v817_v24 }
 0x72f   :  { %v820_v27 = vrot.slane %v819_v26, 1 }
 0x731   :  { %v821_v28 = vadd.f32 %v820_v27, %v819_v26 }
 0x733   :  { %v822_v29 = vmul.f32 0.00390625, %v821_v28 }
 0x735   :  { %v823_v30 = vsub.f32 %v808_v19, %v822_v29  ;;  %v939_v29 = vld [vmem:[#allocation9 + $0x390] sm:$0xff] }
 0x736   :  { %957 = vmatpush.msrb.mxu0 %v939_v29  ;;  %v1060_v29 = vld [vmem:[#allocation9 + $0x3a8] sm:$0xff] }
 0x737   :  { %v824_v31 = vmul.f32 %v823_v30, %v823_v30 }
 0x739   :  { %v825_v32 = vsel %vm811_vm14, %v824_v31, 0.0 }
 0x73a   :  { %826 = vadd.xlane.f32.xlu2 %v825_v32  ;;  %v937_v32 = vld [vmem:[#allocation9 + $0x380] sm:$0xff] }
 0x7ad   :  { %v827_v43 = vpop.xlane.xlu2 %826 }
 0x7ae   :  { %v828_v45 = vsel %vm811_vm14, %v827_v43, 0.0 }
 0x7af   :  { %v829_v46 = vrot.slane %v828_v45, 4 }
 0x7b1   :  { %v830_v50 = vadd.f32 %v829_v46, %v828_v45  ;;  %v931_v46 = vstv %s1161_s8 }
 0x7b3   :  { %v831_v53 = vrot.slane %v830_v50, 2 }
 0x7b5   :  { %v832_v55 = vadd.f32 %v831_v53, %v830_v50 }
 0x7b7   :  { %v833_v56 = vrot.slane %v832_v55, 1 }
 0x7b9   :  { %v834_v57 = vadd.f32 %v833_v56, %v832_v55 }
 0x7bb   :  { %v835_v58 = vmul.f32 0.00390625, %v834_v57 }
 0x7bd   :  { %v836_v59 = vadd.f32 1e-05, %v835_v58 }
 0x7bf   :  { %1212 = vrsqrt.f32 %v836_v59  ;;  %vm843_vm1 = vweird.f32 %v836_v59 }
 0x7c5   :  { %v1213_v60 = vpop.eup %1212 }
 0x7c6   :  { %v838_v61 = vmul.f32 %v1213_v60, %v836_v59  ;;  %vm844_vm15 = vweird.f32 %v1213_v60 }
 0x7c7   :  { %vm845_vm3 = vmor %vm843_vm1, %vm844_vm15 }
 0x7c8   :  { %v839_v62 = vmul.f32 %v1213_v60, %v838_v61 }
 0x7ca   :  { %v840_v63 = vmul.f32 0.5, %v839_v62 }
 0x7cc   :  { %v841_v48 = vsub.f32 1.5, %v840_v63 }
 0x7ce   :  { %v842_v0 = vmul.f32 %v1213_v60, %v841_v48 }
 0x7d0   :  { %v846_v1 = vsel %vm845_vm3, %v1213_v60, %v842_v0 }
 0x7d1   :  { %v847_v4 = vmul.f32 %v846_v1, %v823_v30  ;;  %v938_v30 = vld [vmem:[#allocation9 + $0x388] sm:$0xff] }
 0x7d2   :  { %958 = vmatpush.msrb.mxu0 %v938_v30  ;;  %v1188_v30 = vld [vmem:[#allocation9 + $0x3cd] ss:$0 sm:$0xff] }
 0x7d3   :  { %v849_v7 = vmul.f32 %v848_v3, %v847_v4 }
 0x7d4   :  { %959 = vmatpush.msrb.mxu0 %v937_v32 }
 0x7d5   :  { %v851_v2 = vadd.f32 %v850_v5, %v849_v7 }
 0x7d6   :  { %960 = vmatpush.msrb.mxu0 %v936_v34 }
 0x7d7   :  { %v853_v9 = vmul.f32 %v852_v8, %v851_v2 }
 0x7d9   :  { %888 = vmatmul.f32.vlgmr.msra.gmra.mxu3 %v853_v9  ;;  %v1008_v9 = vld [vmem:[#allocation9 + $0x398] sm:$0xf] }
 0x7da   :  { %1166 = vmatpush.msk.msra.mxu1 %vm1015_vm9, %v1008_v9 }
 0x85c   :  { %v889_v11 = vpop.f32.mrf.mxu3 }
 0x85d   :  { %v890_v12 = vadd.f32 %v1186_v10, %v889_v11 }
 0x85f   :  { %v895_v6 = vsel %vm894_vm4, %v890_v12, 0.0 }
 0x860   :  { %896 = vadd.xlane.f32.xlu2 %v895_v6 }
 0x8d3   :  { %v897_v13 = vpop.xlane.xlu2 %896 }
 0x8d4   :  { %v898_v14 = vsel %vm811_vm14, %v897_v13, 0.0 }
 0x8d5   :  { %v899_v15 = vrot.slane %v898_v14, 4 }
 0x8d7   :  { %v900_v16 = vadd.f32 %v899_v15, %v898_v14 }
 0x8d9   :  { %v901_v17 = vrot.slane %v900_v16, 2 }
 0x8db   :  { %v902_v18 = vadd.f32 %v901_v17, %v900_v16 }
 0x8dd   :  { %v903_v19 = vrot.slane %v902_v18, 1 }
 0x8df   :  { %v904_v20 = vadd.f32 %v903_v19, %v902_v18 }
 0x8e1   :  { %v905_v21 = vmul.f32 0.015625, %v904_v20 }
 0x8e3   :  { %v906_v22 = vsub.f32 %v890_v12, %v905_v21 }
 0x8e5   :  { %v907_v23 = vmul.f32 %v906_v22, %v906_v22 }
 0x8e7   :  { %v908_v24 = vsel %vm894_vm4, %v907_v23, 0.0 }
 0x8e8   :  { %909 = vadd.xlane.f32.xlu2 %v908_v24  ;;  %v1006_v24 = vstv %s1165_s11 }
 0x95b   :  { %v910_v25 = vpop.xlane.xlu2 %909 }
 0x95c   :  { %v911_v26 = vsel %vm811_vm14, %v910_v25, 0.0 }
 0x95d   :  { %v912_v27 = vrot.slane %v911_v26, 4 }
 0x95f   :  { %v913_v28 = vadd.f32 %v912_v27, %v911_v26  ;;  %v1062_v27 = vld [vmem:[#allocation9 + $0x3b8] sm:$0xff] }
 0x960   :  { %1080 = vmatpush.msra.mxu0 %v1062_v27 }
 0x961   :  { %v914_v31 = vrot.slane %v913_v28, 2 }
 0x963   :  { %v915_v33 = vadd.f32 %v914_v31, %v913_v28  ;;  %v1061_v28 = vld [vmem:[#allocation9 + $0x3b0] sm:$0xff]  ;;  %v1059_v31 = vld [vmem:[#allocation9 + $0x3a0] sm:$0xff] }
 0x964   :  { %1081 = vmatpush.msra.mxu0 %v1061_v28 }
 0x965   :  { %v916_v35 = vrot.slane %v915_v33, 1 }
 0x966   :  { %1082 = vmatpush.msra.mxu0 %v1060_v29 }
 0x967   :  { %v917_v36 = vadd.f32 %v916_v35, %v915_v33 }
 0x968   :  { %1083 = vmatpush.msra.mxu0 %v1059_v31 }
 0x969   :  { %v918_v37 = vmul.f32 0.015625, %v917_v36 }
 0x96b   :  { %v919_v38 = vadd.f32 1e-05, %v918_v37 }
 0x96d   :  { %1214 = vrsqrt.f32 %v919_v38  ;;  %vm926_vm6 = vweird.f32 %v919_v38 }
 0x973   :  { %v1215_v39 = vpop.eup %1214 }
 0x974   :  { %v921_v40 = vmul.f32 %v1215_v39, %v919_v38  ;;  %vm927_vm5 = vweird.f32 %v1215_v39 }
 0x975   :  { %vm928_vm7 = vmor %vm926_vm6, %vm927_vm5 }
 0x976   :  { %v922_v41 = vmul.f32 %v1215_v39, %v921_v40 }
 0x978   :  { %v923_v42 = vmul.f32 0.5, %v922_v41 }
 0x97a   :  { %v924_v43 = vsub.f32 1.5, %v923_v42 }
 0x97c   :  { %v925_v44 = vmul.f32 %v1215_v39, %v924_v43 }
 0x97e   :  { %v929_v45 = vsel %vm928_vm7, %v1215_v39, %v925_v44 }
 0x97f   :  { %v930_v47 = vmul.f32 %v929_v45, %v906_v22  ;;  %v1004_v22 = vstv %s1164_s10 }
 0x981   :  { %v932_v50 = vmul.f32 %v931_v46, %v930_v47 }
 0x983   :  { %v1486_v51 = vadd.f32 %v933_v49, %v932_v50  ;;  %v1189_v49 = vld [vmem:[#allocation9 + $0x3ce] ss:$0 sm:$0xff] }
 0x985   :  { %v935_v53 = vmax.f32 %v1486_v51, 0.0 }
 0x987   :  { %1163 = vmatmul.msk.f32.vlgmr.msrb.gmra.mxu0 %vm84_vm0, %v935_v53 }
 0xa04   :  { %v962_v55 = vpop.f32.mrf.mxu0 }
 0xa05   :  { %v963_v52 = vadd.f32 %v1187_v54, %v962_v55 }
 0xa07   :  { %v968_v56 = vsel %vm967_vm8, %v963_v52, 0.0 }
 0xa08   :  { %969 = vadd.xlane.f32.xlu2 %v968_v56 }
 0xa7b   :  { %v970_v57 = vpop.xlane.xlu2 %969 }
 0xa7c   :  { %v971_v58 = vsel %vm811_vm14, %v970_v57, 0.0 }
 0xa7d   :  { %v972_v59 = vrot.slane %v971_v58, 4 }
 0xa7f   :  { %v973_v60 = vadd.f32 %v972_v59, %v971_v58 }
 0xa81   :  { %v974_v61 = vrot.slane %v973_v60, 2 }
 0xa83   :  { %v975_v62 = vadd.f32 %v974_v61, %v973_v60 }
 0xa85   :  { %v976_v63 = vrot.slane %v975_v62, 1 }
 0xa87   :  { %v977_v48 = vadd.f32 %v976_v63, %v975_v62 }
 0xa89   :  { %v978_v0 = vmul.f32 0.125, %v977_v48 }
 0xa8b   :  { %v979_v1 = vsub.f32 %v963_v52, %v978_v0 }
 0xa8d   :  { %v980_v3 = vmul.f32 %v979_v1, %v979_v1 }
 0xa8f   :  { %v981_v4 = vsel %vm967_vm8, %v980_v3, 0.0 }
 0xa90   :  { %982 = vadd.xlane.f32.xlu1 %v981_v4 }
 0xb03   :  { %v983_v5 = vpop.xlane.xlu1 %982 }
 0xb04   :  { %v984_v7 = vsel %vm811_vm14, %v983_v5, 0.0 }
 0xb05   :  { %v985_v8 = vrot.slane %v984_v7, 4 }
 0xb07   :  { %v986_v2 = vadd.f32 %v985_v8, %v984_v7 }
 0xb09   :  { %v987_v10 = vrot.slane %v986_v2, 2 }
 0xb0b   :  { %v988_v11 = vadd.f32 %v987_v10, %v986_v2 }
 0xb0d   :  { %v989_v12 = vrot.slane %v988_v11, 1 }
 0xb0f   :  { %v990_v6 = vadd.f32 %v989_v12, %v988_v11 }
 0xb11   :  { %v991_v13 = vmul.f32 0.125, %v990_v6 }
 0xb13   :  { %v992_v14 = vadd.f32 1e-05, %v991_v13 }
 0xb15   :  { %1216 = vrsqrt.f32 %v992_v14  ;;  %vm999_vm2 = vweird.f32 %v992_v14 }
 0xb1b   :  { %v1217_v15 = vpop.eup %1216 }
 0xb1c   :  { %v994_v16 = vmul.f32 %v1217_v15, %v992_v14  ;;  %vm1000_vm10 = vweird.f32 %v1217_v15 }
 0xb1d   :  { %vm1001_vm11 = vmor %vm999_vm2, %vm1000_vm10 }
 0xb1e   :  { %v995_v17 = vmul.f32 %v1217_v15, %v994_v16 }
 0xb20   :  { %v996_v18 = vmul.f32 0.5, %v995_v17 }
 0xb22   :  { %v997_v19 = vsub.f32 1.5, %v996_v18 }
 0xb24   :  { %v998_v20 = vmul.f32 %v1217_v15, %v997_v19 }
 0xb26   :  { %v1002_v21 = vsel %vm1001_vm11, %v1217_v15, %v998_v20 }
 0xb27   :  { %v1003_v23 = vmul.f32 %v1002_v21, %v979_v1 }
 0xb29   :  { %v1005_v25 = vmul.f32 %v1004_v22, %v1003_v23 }
 0xb2b   :  { %v1007_v26 = vadd.f32 %v1006_v24, %v1005_v25 }
 0xb2d   :  { %1167 = vmatmul.msk.f32.vlgmr.msra.gmra.mxu1 %vm1011_vm12, %v1007_v26 }
 0xbaa   :  { %v1036_v32 = vpop.f32.mrf.mxu1 }
 0xbab   :  { %v1037_v33 = vadd.f32 %v1188_v30, %v1036_v32 }
 0xbad   :  { %v1168_v34 = vmul.f32 -1.442695, %v1037_v33 }
 0xbaf   :  { %1218 = vpow2.f32 %v1168_v34 }
 0xbb5   :  { %v1219_v35 = vpop.eup %1218 }
 0xbb6   :  { %v1042_v36 = vadd.f32 1.0, %v1219_v35 }
 0xbb8   :  { %1220 = vrcp.f32 %v1042_v36  ;;  %v1054_v40 = vand.u32 2147483648, %v1042_v36  ;;  %v1052_v42 = vand.u32 2147483647, %v1042_v36  ;;  %vm1048_vm14 = vweird.f32 %v1042_v36 }
 0xbba   :  { %v1055_v44 = vor.u32 1.1754944e-38, %v1054_v40  ;;  %vm1053_vm1 = vcmp.eq.f32.partialorder %v1052_v42, 8.507059e+37 }
 0xbbe   :  { %v1221_v37 = vpop.eup %1220 }
 0xbbf   :  { %v1044_v38 = vmul.f32 %v1221_v37, %v1042_v36  ;;  %vm1049_vm13 = vweird.f32 %v1221_v37 }
 0xbc0   :  { %vm1050_vm15 = vmor %vm1048_vm14, %vm1049_vm13 }
 0xbc1   :  { %v1045_v39 = vsub.f32 1.0, %v1044_v38 }
 0xbc3   :  { %v1046_v41 = vmul.f32 %v1221_v37, %v1045_v39 }
 0xbc5   :  { %v1047_v43 = vadd.f32 %v1221_v37, %v1046_v41 }
 0xbc7   :  { %v1051_v45 = vsel %vm1050_vm15, %v1221_v37, %v1047_v43 }
 0xbc8   :  { %v1056_v46 = vsel %vm1053_vm1, %v1055_v44, %v1051_v45 }
 0xbc9   :  { %v1058_v47 = vmul.f32 %v1056_v46, %v935_v53 }
 0xbcb   :  { %1169 = vmatmul.msk.f32.vlgmr.msra.gmra.mxu0 %vm84_vm0, %v1058_v47 }
 0xc48   :  { %v1085_v50 = vpop.f32.mrf.mxu0 }
 0xc49   :  { %v1086_v54 = vadd.f32 %v1189_v49, %v1085_v50 }
 0xc4b   :  { %v1170_v55 = vmul.f32 -1.442695, %v1086_v54 }
 0xc4d   :  { %1222 = vpow2.f32 %v1170_v55 }
 0xc53   :  { %v1223_v52 = vpop.eup %1222 }
 0xc54   :  { %v1091_v56 = vadd.f32 1.0, %v1223_v52 }
 0xc56   :  { %1224 = vrcp.f32 %v1091_v56  ;;  %v1103_v60 = vand.u32 2147483648, %v1091_v56  ;;  %v1101_v62 = vand.u32 2147483647, %v1091_v56  ;;  %vm1097_vm0 = vweird.f32 %v1091_v56 }
 0xc58   :  { %v1104_v53 = vor.u32 1.1754944e-38, %v1103_v60  ;;  %vm1102_vm5 = vcmp.eq.f32.partialorder %v1101_v62, 8.507059e+37 }
 0xc5c   :  { %v1225_v57 = vpop.eup %1224 }
 0xc5d   :  { %v1093_v58 = vmul.f32 %v1225_v57, %v1091_v56  ;;  %vm1098_vm3 = vweird.f32 %v1225_v57 }
 0xc5e   :  { %vm1099_vm4 = vmor %vm1097_vm0, %vm1098_vm3 }
 0xc5f   :  { %v1094_v59 = vsub.f32 1.0, %v1093_v58 }
 0xc61   :  { %v1095_v61 = vmul.f32 %v1225_v57, %v1094_v59 }
 0xc63   :  { %v1096_v51 = vadd.f32 %v1225_v57, %v1095_v61 }
 0xc65   :  { %v1100_v63 = vsel %vm1099_vm4, %v1225_v57, %v1096_v51 }
 0xc66   :  { %v1105_v48 = vsel %vm1102_vm5, %v1104_v53, %v1100_v63 }
 0xc67   :  { %1107 = vst [vmem:[#allocation10] sm:$0x3] %v1105_v48 }
 0xc68   :  { %1118 = dma.vmem_to_hbm [thread:$0]  %s1114_s13, 32, %s1116_s16, [#allocation4]  }
 0xc69   :  { %1342 = dma.done.wait [#allocation4], 32  }
 0xc6a   :  { %1343 = vsyncadd [#allocation4], 4294967264 }
 0xc6b   :  { %1123 = vsyncpa [#allocation3], 1 }
 0xc6c   :  { %1124 = vsyncpa [#allocation7], 1 }
 0xc6d   :  { %1125 = vsyncpa [#allocation4], 1 }
 0xc6e   :  { %1126 = vsyncpa [#allocation5], 1 }

</bundles_post_ra>
